<compile_context>
chip_gen: v7x
topology: tpu7x:2x2x1
jax: 0.10.0
libtpu: 0.0.40
codegen_flags: <defaults>
</compile_context>

<pallas_src>
import jax
import jax.numpy as jnp
from jax.experimental import pallas as pl
from jax.experimental.pallas import tpu as pltpu

HIDDEN = 128               # HIDDEN_SIZE
NUM_IN = 1                 # NUM_INPUT_PARAMETERS
NUM_OUT = 1                # NUM_OUTPUT_PARAMETERS
SEQ_PAST = 30              # SEQ_LEN_PAST
SEQ_FUT = 3                # SEQ_LEN_FUTURE
K = 3                      # conv kernel size
L1 = SEQ_PAST - (K - 1)    # 28
L2 = L1 - (K - 1)          # 26
L3 = L2 - (K - 1)          # 24
LP = L3 // 2               # 12  (== (SEQ_LEN_PAST - 6) // 2)
OUT_PAD = 128              # lane-dense padded output width (>= SEQ_FUT)


def _round_up(n, m):
    return (n + m - 1) // m * m


def conv_mlp_kernel(x_ref, w1_ref, b1_ref, w2_ref, b2_ref, w3_ref, b3_ref,
                    wd_ref, bd_ref, wo_ref, bo_ref, out_ref):
    TB = x_ref.shape[1]                                   # batch tile (mult of 8)

    # x is already time-major: (SEQ_PAST, TB)
    xt = x_ref[...]

    # ---- inputLayer: Conv1d(1 -> 128, k=3) + ReLU (C_in==1 -> f32 VPU broadcast)
    w1 = w1_ref[...]                                      # (K, H) f32
    acc1 = jnp.broadcast_to(b1_ref[...], (L1, TB, HIDDEN)).astype(jnp.float32)
    for k in range(K):
        acc1 = acc1 + xt[k:k + L1, :, None] * w1[k][None, None, :]
    h1 = jnp.maximum(acc1, 0.0)                           # (L1, TB, H) f32
    h1b = h1.astype(jnp.bfloat16)                         # cast once, slice per tap
    # TODO(synk): nn.Dropout(0.3) is train-mode only; eval-mode identity here.

    # ---- convLayer1: Conv1d(128 -> 128, k=3) + ReLU
    # batch is folded into M: each tap is a (L2*TB, 128) @ (128, 128) matmul.
    acc2 = jnp.broadcast_to(b2_ref[...], (L2 * TB, HIDDEN)).astype(jnp.float32)
    for k in range(K):
        hk = h1b[k:k + L2].reshape(L2 * TB, HIDDEN)
        acc2 = acc2 + jnp.dot(hk, w2_ref[k], preferred_element_type=jnp.float32)
    h2 = jnp.maximum(acc2, 0.0).reshape(L2, TB, HIDDEN)
    h2b = h2.astype(jnp.bfloat16)

    # ---- convLayer2: Conv1d(128 -> 128, k=3) + ReLU
    acc3 = jnp.broadcast_to(b3_ref[...], (L3 * TB, HIDDEN)).astype(jnp.float32)
    for k in range(K):
        hk = h2b[k:k + L3].reshape(L3 * TB, HIDDEN)
        acc3 = acc3 + jnp.dot(hk, w3_ref[k], preferred_element_type=jnp.float32)
    h3 = jnp.maximum(acc3, 0.0).reshape(L3, TB, HIDDEN)

    # ---- AvgPool1d(k=2): one vectorized pass over (LP, TB, H)
    h3p = h3.reshape(LP, 2, TB, HIDDEN)
    pooled = ((h3p[:, 0] + h3p[:, 1]) * 0.5).astype(jnp.bfloat16)   # (LP, TB, H)

    # ---- denseLayer (Linear 1536 -> 128) + ReLU, flatten fused into wd layout:
    # pcat[:, l*H + c] == pooled[l, :, c]; wd_ref rows are ordered the same way.
    pcat = jnp.concatenate([pooled[l] for l in range(LP)], axis=1)  # (TB, LP*H)
    dh = jnp.maximum(
        jnp.dot(pcat, wd_ref[...], preferred_element_type=jnp.float32)
        + bd_ref[...], 0.0)                                         # (TB, H) f32

    # ---- outputLayout: Linear(128 -> 3), zero-padded to 128 lanes for dense vst
    out = (jnp.dot(dh.astype(jnp.bfloat16), wo_ref[...],
                   preferred_element_type=jnp.float32) + bo_ref[...])  # (TB, 128)
    out_ref[...] = out


def own_conv1d_forward(x_ncl, params, *, batch_tile=128):
    """x_ncl: (B, NUM_IN, SEQ_PAST) float32 (PyTorch NCL layout). Returns (B, 3)."""
    (w1, b1, w2, b2, w3, b3, wd, bd, wo, bo) = params
    B = x_ncl.shape[0]
    x2d = x_ncl.reshape(B, SEQ_PAST).astype(jnp.float32)  # NUM_IN == 1

    # batch tile: multiple of 8, capped at batch_tile (128 fills the MXU M dim)
    TB = min(batch_tile, _round_up(B, 8))
    Bp = _round_up(B, TB)
    if Bp != B:
        x2d = jnp.pad(x2d, ((0, Bp - B), (0, 0)))
    x_tm = x2d.T                                           # time-major (SEQ_PAST, Bp)

    out = pl.pallas_call(
        conv_mlp_kernel,
        out_shape=jax.ShapeDtypeStruct((Bp, OUT_PAD), jnp.float32),
        grid=(Bp // TB,),
        in_specs=[
            pl.BlockSpec((SEQ_PAST, TB), lambda i: (0, i)),        # x (time-major)
            pl.BlockSpec((K, HIDDEN), lambda i: (0, 0)),           # w1 (f32)
            pl.BlockSpec((1, HIDDEN), lambda i: (0, 0)),           # b1
            pl.BlockSpec((K, HIDDEN, HIDDEN), lambda i: (0, 0, 0)),  # w2 (bf16)
            pl.BlockSpec((1, HIDDEN), lambda i: (0, 0)),           # b2
            pl.BlockSpec((K, HIDDEN, HIDDEN), lambda i: (0, 0, 0)),  # w3 (bf16)
            pl.BlockSpec((1, HIDDEN), lambda i: (0, 0)),           # b3
            pl.BlockSpec((LP * HIDDEN, HIDDEN), lambda i: (0, 0)),  # wd (bf16)
            pl.BlockSpec((1, HIDDEN), lambda i: (0, 0)),           # bd
            pl.BlockSpec((HIDDEN, OUT_PAD), lambda i: (0, 0)),     # wo (bf16, padded)
            pl.BlockSpec((1, OUT_PAD), lambda i: (0, 0)),          # bo (padded)
        ],
        out_specs=pl.BlockSpec((TB, OUT_PAD), lambda i: (i, 0)),
        compiler_params=pltpu.CompilerParams(
            dimension_semantics=("parallel",),
            vmem_limit_bytes=32 * 1024 * 1024),
    )(x_tm, w1, b1, w2, b2, w3, b3, wd, bd, wo, bo)
    return out[:B, :SEQ_FUT * NUM_OUT]                    # (B, 3)


# ------------------------- parameter setup (deterministic) -------------------

def make_params(key):
    """Create PyTorch-shaped weights deterministically, return both the
    torch-layout params (for the reference) and kernel-layout params."""
    ks = jax.random.split(key, 10)

    def u(k, shape, fan_in):
        bound = 1.0 / jnp.sqrt(jnp.float32(fan_in))
        return jax.random.uniform(k, shape, jnp.float32, -bound, bound)

    w1_t = u(ks[0], (HIDDEN, NUM_IN, K), NUM_IN * K)          # (128, 1, 3)
    b1_t = u(ks[1], (HIDDEN,), NUM_IN * K)
    w2_t = u(ks[2], (HIDDEN, HIDDEN, K), HIDDEN * K)          # (128, 128, 3)
    b2_t = u(ks[3], (HIDDEN,), HIDDEN * K)
    w3_t = u(ks[4], (HIDDEN, HIDDEN, K), HIDDEN * K)          # (128, 128, 3)
    b3_t = u(ks[5], (HIDDEN,), HIDDEN * K)
    wd_t = u(ks[6], (HIDDEN, HIDDEN * LP), HIDDEN * LP)       # (128, 1536)
    bd_t = u(ks[7], (HIDDEN,), HIDDEN * LP)
    wo_t = u(ks[8], (SEQ_FUT * NUM_OUT, HIDDEN), HIDDEN)      # (3, 128)
    bo_t = u(ks[9], (SEQ_FUT * NUM_OUT,), HIDDEN)

    torch_params = (w1_t, b1_t, w2_t, b2_t, w3_t, b3_t, wd_t, bd_t, wo_t, bo_t)

    # kernel layouts
    w1_k = jnp.transpose(w1_t, (2, 1, 0)).reshape(K, HIDDEN)          # (K, H) f32
    w2_k = jnp.transpose(w2_t, (2, 1, 0)).astype(jnp.bfloat16)        # (K, Cin, Cout)
    w3_k = jnp.transpose(w3_t, (2, 1, 0)).astype(jnp.bfloat16)
    # dense weight: (O, C*LP) channel-major -> (O, C, LP) -> (LP, C, O) -> (LP*C, O)
    wd_k = (jnp.transpose(wd_t.reshape(HIDDEN, HIDDEN, LP), (2, 1, 0))
            .reshape(LP * HIDDEN, HIDDEN).astype(jnp.bfloat16))
    # output weight/bias: transpose + zero-pad to 128 lanes
    wo_k = jnp.zeros((HIDDEN, OUT_PAD), jnp.float32)
    wo_k = wo_k.at[:, :SEQ_FUT * NUM_OUT].set(wo_t.T).astype(jnp.bfloat16)
    bo_k = jnp.zeros((1, OUT_PAD), jnp.float32)
    bo_k = bo_k.at[0, :SEQ_FUT * NUM_OUT].set(bo_t)

    kernel_params = (w1_k, b1_t.reshape(1, HIDDEN),
                     w2_k, b2_t.reshape(1, HIDDEN),
                     w3_k, b3_t.reshape(1, HIDDEN),
                     wd_k, bd_t.reshape(1, HIDDEN),
                     wo_k, bo_k)
    return torch_params, kernel_params


# ------------------------- pure-JAX reference (for checking) -----------------

def reference_forward(x_ncl, torch_params):
    w1, b1, w2, b2, w3, b3, wd, bd, wo, bo = torch_params

    def conv1d(x, w, b):  # x: (B, C, L), w: (O, C, Kk), b: (O,)
        O, C, Kk = w.shape
        Lout = x.shape[-1] - Kk + 1
        wf = w.reshape(O, C * Kk)
        outs = []
        for t in range(Lout):
            patch = x[:, :, t:t + Kk].reshape(x.shape[0], C * Kk)
            outs.append(patch @ wf.T + b)
        return jnp.stack(outs, axis=-1)                    # (B, O, Lout)

    h = jax.nn.relu(conv1d(x_ncl, w1, b1))
    h = jax.nn.relu(conv1d(h, w2, b2))
    h = jax.nn.relu(conv1d(h, w3, b3))
    B, C, L = h.shape
    h = h.reshape(B, C, L // 2, 2).mean(-1)                # AvgPool1d(2)
    h = h.reshape(B, C * (L // 2))                         # channel-major flatten
    h = jax.nn.relu(h @ wd.T + bd)
    return h @ wo.T + bo


if __name__ == "__main__":
    key = jax.random.PRNGKey(0)
    k_x, k_p, k_x2 = jax.random.split(key, 3)

    torch_params, kernel_params = make_params(k_p)

    # small smoke test (B=2, padded up to one 8-row batch tile)
    B = 2
    x = jax.random.normal(k_x, (B, NUM_IN, SEQ_PAST), jnp.float32)  # (2, 1, 30)
    out = jax.block_until_ready(own_conv1d_forward(x, kernel_params))
    assert out.shape == (B, SEQ_FUT * NUM_OUT)
    ref = reference_forward(x, torch_params)
    assert jnp.allclose(out, ref, rtol=5e-2, atol=5e-2), (out, ref)

    # batched path: non-multiple-of-TB batch, grid length > 1, TB = 128
    B2 = 200
    x2 = jax.random.normal(k_x2, (B2, NUM_IN, SEQ_PAST), jnp.float32)
    out2 = jax.block_until_ready(own_conv1d_forward(x2, kernel_params))
    assert out2.shape == (B2, SEQ_FUT * NUM_OUT)
    ref2 = reference_forward(x2, torch_params)
    assert jnp.allclose(out2, ref2, rtol=5e-2, atol=5e-2)

    print("KERNEL_OK")
</pallas_src>

<mosaic_0001>
module attributes {stable_mosaic.version = 11 : i64} {
  func.func @conv_mlp_kernel(%arg0: i32, %arg1: memref<30x8xf32, #tpu.memory_space<vmem>>, %arg2: memref<3x128xf32, #tpu.memory_space<vmem>>, %arg3: memref<1x128xf32, #tpu.memory_space<vmem>>, %arg4: memref<3x128x128xbf16, #tpu.memory_space<vmem>>, %arg5: memref<1x128xf32, #tpu.memory_space<vmem>>, %arg6: memref<3x128x128xbf16, #tpu.memory_space<vmem>>, %arg7: memref<1x128xf32, #tpu.memory_space<vmem>>, %arg8: memref<1536x128xbf16, #tpu.memory_space<vmem>>, %arg9: memref<1x128xf32, #tpu.memory_space<vmem>>, %arg10: memref<128x128xbf16, #tpu.memory_space<vmem>>, %arg11: memref<1x128xf32, #tpu.memory_space<vmem>>, %arg12: memref<8x128xf32, #tpu.memory_space<vmem>>) attributes {dimension_semantics = [#tpu.dimension_semantics<parallel>], iteration_bounds = array<i64: 1>, scalar_prefetch = 0 : i64, scratch_operands = 0 : i64, tpu.core_type = #tpu.core_type<tc>, window_params = [{transform_indices = @transform_0, window_bounds = array<i64: 30, 8>}, {pipeline_mode = #tpu.pipeline_mode<synchronous>, transform_indices = @transform_1, window_bounds = array<i64: 3, 128>}, {pipeline_mode = #tpu.pipeline_mode<synchronous>, transform_indices = @transform_2, window_bounds = array<i64: 1, 128>}, {pipeline_mode = #tpu.pipeline_mode<synchronous>, transform_indices = @transform_3, window_bounds = array<i64: 3, 128, 128>}, {pipeline_mode = #tpu.pipeline_mode<synchronous>, transform_indices = @transform_4, window_bounds = array<i64: 1, 128>}, {pipeline_mode = #tpu.pipeline_mode<synchronous>, transform_indices = @transform_5, window_bounds = array<i64: 3, 128, 128>}, {pipeline_mode = #tpu.pipeline_mode<synchronous>, transform_indices = @transform_6, window_bounds = array<i64: 1, 128>}, {pipeline_mode = #tpu.pipeline_mode<synchronous>, transform_indices = @transform_7, window_bounds = array<i64: 1536, 128>}, {pipeline_mode = #tpu.pipeline_mode<synchronous>, transform_indices = @transform_8, window_bounds = array<i64: 1, 128>}, {pipeline_mode = #tpu.pipeline_mode<synchronous>, transform_indices = @transform_9, window_bounds = array<i64: 128, 128>}, {pipeline_mode = #tpu.pipeline_mode<synchronous>, transform_indices = @transform_10, window_bounds = array<i64: 1, 128>}, {transform_indices = @transform_11, window_bounds = array<i64: 8, 128>}]} {
    %c0 = arith.constant 0 : index
    %c0_0 = arith.constant 0 : index
    %0 = vector.load %arg1[%c0, %c0_0] : memref<30x8xf32, #tpu.memory_space<vmem>>, vector<30x8xf32>
    %c0_1 = arith.constant 0 : index
    %c0_2 = arith.constant 0 : index
    %1 = vector.load %arg2[%c0_1, %c0_2] : memref<3x128xf32, #tpu.memory_space<vmem>>, vector<3x128xf32>
    %c0_3 = arith.constant 0 : index
    %c0_4 = arith.constant 0 : index
    %2 = vector.load %arg3[%c0_3, %c0_4] : memref<1x128xf32, #tpu.memory_space<vmem>>, vector<1x128xf32>
    %3 = vector.shape_cast %2 : vector<1x128xf32> to vector<1x1x128xf32>
    %4 = vector.broadcast %3 : vector<1x1x128xf32> to vector<28x8x128xf32>
    %5 = vector.extract_strided_slice %0 {offsets = [0, 0], sizes = [28, 8], strides = [1, 1]} : vector<30x8xf32> to vector<28x8xf32>
    %6 = vector.shape_cast %5 : vector<28x8xf32> to vector<28x8x1xf32>
    %7 = vector.extract_strided_slice %1 {offsets = [0, 0], sizes = [1, 128], strides = [1, 1]} : vector<3x128xf32> to vector<1x128xf32>
    %8 = vector.shape_cast %7 : vector<1x128xf32> to vector<128xf32>
    %9 = vector.shape_cast %8 : vector<128xf32> to vector<1x1x128xf32>
    %10 = vector.broadcast %6 : vector<28x8x1xf32> to vector<28x8x128xf32>
    %11 = vector.broadcast %9 : vector<1x1x128xf32> to vector<28x8x128xf32>
    %12 = arith.mulf %10, %11 : vector<28x8x128xf32>
    %13 = arith.addf %4, %12 : vector<28x8x128xf32>
    %14 = vector.extract_strided_slice %0 {offsets = [1, 0], sizes = [28, 8], strides = [1, 1]} : vector<30x8xf32> to vector<28x8xf32>
    %15 = vector.shape_cast %14 : vector<28x8xf32> to vector<28x8x1xf32>
    %16 = vector.extract_strided_slice %1 {offsets = [1, 0], sizes = [1, 128], strides = [1, 1]} : vector<3x128xf32> to vector<1x128xf32>
    %17 = vector.shape_cast %16 : vector<1x128xf32> to vector<128xf32>
    %18 = vector.shape_cast %17 : vector<128xf32> to vector<1x1x128xf32>
    %19 = vector.broadcast %15 : vector<28x8x1xf32> to vector<28x8x128xf32>
    %20 = vector.broadcast %18 : vector<1x1x128xf32> to vector<28x8x128xf32>
    %21 = arith.mulf %19, %20 : vector<28x8x128xf32>
    %22 = arith.addf %13, %21 : vector<28x8x128xf32>
    %23 = vector.extract_strided_slice %0 {offsets = [2, 0], sizes = [28, 8], strides = [1, 1]} : vector<30x8xf32> to vector<28x8xf32>
    %24 = vector.shape_cast %23 : vector<28x8xf32> to vector<28x8x1xf32>
    %25 = vector.extract_strided_slice %1 {offsets = [2, 0], sizes = [1, 128], strides = [1, 1]} : vector<3x128xf32> to vector<1x128xf32>
    %26 = vector.shape_cast %25 : vector<1x128xf32> to vector<128xf32>
    %27 = vector.shape_cast %26 : vector<128xf32> to vector<1x1x128xf32>
    %28 = vector.broadcast %24 : vector<28x8x1xf32> to vector<28x8x128xf32>
    %29 = vector.broadcast %27 : vector<1x1x128xf32> to vector<28x8x128xf32>
    %30 = arith.mulf %28, %29 : vector<28x8x128xf32>
    %31 = arith.addf %22, %30 : vector<28x8x128xf32>
    %cst = arith.constant 0.000000e+00 : f32
    %32 = vector.broadcast %cst : f32 to vector<28x8x128xf32>
    %33 = arith.maximumf %31, %32 : vector<28x8x128xf32>
    %34 = arith.truncf %33 : vector<28x8x128xf32> to vector<28x8x128xbf16>
    %c0_5 = arith.constant 0 : index
    %c0_6 = arith.constant 0 : index
    %35 = vector.load %arg5[%c0_5, %c0_6] : memref<1x128xf32, #tpu.memory_space<vmem>>, vector<1x128xf32>
    %36 = vector.shape_cast %35 : vector<1x128xf32> to vector<1x128xf32>
    %37 = vector.broadcast %36 : vector<1x128xf32> to vector<208x128xf32>
    %38 = vector.extract_strided_slice %34 {offsets = [0, 0, 0], sizes = [26, 8, 128], strides = [1, 1, 1]} : vector<28x8x128xbf16> to vector<26x8x128xbf16>
    %39 = vector.shape_cast %38 : vector<26x8x128xbf16> to vector<208x128xbf16>
    %c0_7 = arith.constant 0 : index
    %c0_8 = arith.constant 0 : index
    %c0_9 = arith.constant 0 : index
    %40 = vector.load %arg4[%c0_7, %c0_8, %c0_9] : memref<3x128x128xbf16, #tpu.memory_space<vmem>>, vector<1x128x128xbf16>
    %41 = vector.shape_cast %40 : vector<1x128x128xbf16> to vector<128x128xbf16>
    %cst_10 = arith.constant dense<0.000000e+00> : vector<208x128xf32>
    %42 = tpu.matmul %39, %41, %cst_10 {dimension_numbers = #tpu.dot_dimension_numbers<[1], [0], [0], [1], [0, 0, 1, 1], [], []>} : vector<208x128xbf16>, vector<128x128xbf16>, vector<208x128xf32> -> vector<208x128xf32>
    %43 = arith.addf %37, %42 : vector<208x128xf32>
    %44 = vector.extract_strided_slice %34 {offsets = [1, 0, 0], sizes = [26, 8, 128], strides = [1, 1, 1]} : vector<28x8x128xbf16> to vector<26x8x128xbf16>
    %45 = vector.shape_cast %44 : vector<26x8x128xbf16> to vector<208x128xbf16>
    %c1 = arith.constant 1 : index
    %c0_11 = arith.constant 0 : index
    %c0_12 = arith.constant 0 : index
    %46 = vector.load %arg4[%c1, %c0_11, %c0_12] : memref<3x128x128xbf16, #tpu.memory_space<vmem>>, vector<1x128x128xbf16>
    %47 = vector.shape_cast %46 : vector<1x128x128xbf16> to vector<128x128xbf16>
    %cst_13 = arith.constant dense<0.000000e+00> : vector<208x128xf32>
    %48 = tpu.matmul %45, %47, %cst_13 {dimension_numbers = #tpu.dot_dimension_numbers<[1], [0], [0], [1], [0, 0, 1, 1], [], []>} : vector<208x128xbf16>, vector<128x128xbf16>, vector<208x128xf32> -> vector<208x128xf32>
    %49 = arith.addf %43, %48 : vector<208x128xf32>
    %50 = vector.extract_strided_slice %34 {offsets = [2, 0, 0], sizes = [26, 8, 128], strides = [1, 1, 1]} : vector<28x8x128xbf16> to vector<26x8x128xbf16>
    %51 = vector.shape_cast %50 : vector<26x8x128xbf16> to vector<208x128xbf16>
    %c2 = arith.constant 2 : index
    %c0_14 = arith.constant 0 : index
    %c0_15 = arith.constant 0 : index
    %52 = vector.load %arg4[%c2, %c0_14, %c0_15] : memref<3x128x128xbf16, #tpu.memory_space<vmem>>, vector<1x128x128xbf16>
    %53 = vector.shape_cast %52 : vector<1x128x128xbf16> to vector<128x128xbf16>
    %cst_16 = arith.constant dense<0.000000e+00> : vector<208x128xf32>
    %54 = tpu.matmul %51, %53, %cst_16 {dimension_numbers = #tpu.dot_dimension_numbers<[1], [0], [0], [1], [0, 0, 1, 1], [], []>} : vector<208x128xbf16>, vector<128x128xbf16>, vector<208x128xf32> -> vector<208x128xf32>
    %55 = arith.addf %49, %54 : vector<208x128xf32>
    %cst_17 = arith.constant 0.000000e+00 : f32
    %56 = vector.broadcast %cst_17 : f32 to vector<208x128xf32>
    %57 = arith.maximumf %55, %56 : vector<208x128xf32>
    %58 = vector.shape_cast %57 : vector<208x128xf32> to vector<26x8x128xf32>
    %59 = arith.truncf %58 : vector<26x8x128xf32> to vector<26x8x128xbf16>
    %c0_18 = arith.constant 0 : index
    %c0_19 = arith.constant 0 : index
    %60 = vector.load %arg7[%c0_18, %c0_19] : memref<1x128xf32, #tpu.memory_space<vmem>>, vector<1x128xf32>
    %61 = vector.shape_cast %60 : vector<1x128xf32> to vector<1x128xf32>
    %62 = vector.broadcast %61 : vector<1x128xf32> to vector<192x128xf32>
    %63 = vector.extract_strided_slice %59 {offsets = [0, 0, 0], sizes = [24, 8, 128], strides = [1, 1, 1]} : vector<26x8x128xbf16> to vector<24x8x128xbf16>
    %64 = vector.shape_cast %63 : vector<24x8x128xbf16> to vector<192x128xbf16>
    %c0_20 = arith.constant 0 : index
    %c0_21 = arith.constant 0 : index
    %c0_22 = arith.constant 0 : index
    %65 = vector.load %arg6[%c0_20, %c0_21, %c0_22] : memref<3x128x128xbf16, #tpu.memory_space<vmem>>, vector<1x128x128xbf16>
    %66 = vector.shape_cast %65 : vector<1x128x128xbf16> to vector<128x128xbf16>
    %cst_23 = arith.constant dense<0.000000e+00> : vector<192x128xf32>
    %67 = tpu.matmul %64, %66, %cst_23 {dimension_numbers = #tpu.dot_dimension_numbers<[1], [0], [0], [1], [0, 0, 1, 1], [], []>} : vector<192x128xbf16>, vector<128x128xbf16>, vector<192x128xf32> -> vector<192x128xf32>
    %68 = arith.addf %62, %67 : vector<192x128xf32>
    %69 = vector.extract_strided_slice %59 {offsets = [1, 0, 0], sizes = [24, 8, 128], strides = [1, 1, 1]} : vector<26x8x128xbf16> to vector<24x8x128xbf16>
    %70 = vector.shape_cast %69 : vector<24x8x128xbf16> to vector<192x128xbf16>
    %c1_24 = arith.constant 1 : index
    %c0_25 = arith.constant 0 : index
    %c0_26 = arith.constant 0 : index
    %71 = vector.load %arg6[%c1_24, %c0_25, %c0_26] : memref<3x128x128xbf16, #tpu.memory_space<vmem>>, vector<1x128x128xbf16>
    %72 = vector.shape_cast %71 : vector<1x128x128xbf16> to vector<128x128xbf16>
    %cst_27 = arith.constant dense<0.000000e+00> : vector<192x128xf32>
    %73 = tpu.matmul %70, %72, %cst_27 {dimension_numbers = #tpu.dot_dimension_numbers<[1], [0], [0], [1], [0, 0, 1, 1], [], []>} : vector<192x128xbf16>, vector<128x128xbf16>, vector<192x128xf32> -> vector<192x128xf32>
    %74 = arith.addf %68, %73 : vector<192x128xf32>
    %75 = vector.extract_strided_slice %59 {offsets = [2, 0, 0], sizes = [24, 8, 128], strides = [1, 1, 1]} : vector<26x8x128xbf16> to vector<24x8x128xbf16>
    %76 = vector.shape_cast %75 : vector<24x8x128xbf16> to vector<192x128xbf16>
    %c2_28 = arith.constant 2 : index
    %c0_29 = arith.constant 0 : index
    %c0_30 = arith.constant 0 : index
    %77 = vector.load %arg6[%c2_28, %c0_29, %c0_30] : memref<3x128x128xbf16, #tpu.memory_space<vmem>>, vector<1x128x128xbf16>
    %78 = vector.shape_cast %77 : vector<1x128x128xbf16> to vector<128x128xbf16>
    %cst_31 = arith.constant dense<0.000000e+00> : vector<192x128xf32>
    %79 = tpu.matmul %76, %78, %cst_31 {dimension_numbers = #tpu.dot_dimension_numbers<[1], [0], [0], [1], [0, 0, 1, 1], [], []>} : vector<192x128xbf16>, vector<128x128xbf16>, vector<192x128xf32> -> vector<192x128xf32>
    %80 = arith.addf %74, %79 : vector<192x128xf32>
    %cst_32 = arith.constant 0.000000e+00 : f32
    %81 = vector.broadcast %cst_32 : f32 to vector<192x128xf32>
    %82 = arith.maximumf %80, %81 : vector<192x128xf32>
    %83 = vector.shape_cast %82 : vector<192x128xf32> to vector<24x8x128xf32>
    %84 = vector.shape_cast %83 : vector<24x8x128xf32> to vector<12x2x8x128xf32>
    %85 = vector.extract_strided_slice %84 {offsets = [0, 0, 0, 0], sizes = [12, 1, 8, 128], strides = [1, 1, 1, 1]} : vector<12x2x8x128xf32> to vector<12x1x8x128xf32>
    %86 = vector.shape_cast %85 : vector<12x1x8x128xf32> to vector<12x8x128xf32>
    %87 = vector.extract_strided_slice %84 {offsets = [0, 1, 0, 0], sizes = [12, 1, 8, 128], strides = [1, 1, 1, 1]} : vector<12x2x8x128xf32> to vector<12x1x8x128xf32>
    %88 = vector.shape_cast %87 : vector<12x1x8x128xf32> to vector<12x8x128xf32>
    %89 = arith.addf %86, %88 : vector<12x8x128xf32>
    %cst_33 = arith.constant 5.000000e-01 : f32
    %90 = vector.broadcast %cst_33 : f32 to vector<12x8x128xf32>
    %91 = arith.mulf %89, %90 : vector<12x8x128xf32>
    %92 = arith.truncf %91 : vector<12x8x128xf32> to vector<12x8x128xbf16>
    %93 = vector.extract_strided_slice %92 {offsets = [0, 0, 0], sizes = [1, 8, 128], strides = [1, 1, 1]} : vector<12x8x128xbf16> to vector<1x8x128xbf16>
    %94 = vector.shape_cast %93 : vector<1x8x128xbf16> to vector<8x128xbf16>
    %95 = vector.extract_strided_slice %92 {offsets = [1, 0, 0], sizes = [1, 8, 128], strides = [1, 1, 1]} : vector<12x8x128xbf16> to vector<1x8x128xbf16>
    %96 = vector.shape_cast %95 : vector<1x8x128xbf16> to vector<8x128xbf16>
    %97 = vector.extract_strided_slice %92 {offsets = [2, 0, 0], sizes = [1, 8, 128], strides = [1, 1, 1]} : vector<12x8x128xbf16> to vector<1x8x128xbf16>
    %98 = vector.shape_cast %97 : vector<1x8x128xbf16> to vector<8x128xbf16>
    %99 = vector.extract_strided_slice %92 {offsets = [3, 0, 0], sizes = [1, 8, 128], strides = [1, 1, 1]} : vector<12x8x128xbf16> to vector<1x8x128xbf16>
    %100 = vector.shape_cast %99 : vector<1x8x128xbf16> to vector<8x128xbf16>
    %101 = vector.extract_strided_slice %92 {offsets = [4, 0, 0], sizes = [1, 8, 128], strides = [1, 1, 1]} : vector<12x8x128xbf16> to vector<1x8x128xbf16>
    %102 = vector.shape_cast %101 : vector<1x8x128xbf16> to vector<8x128xbf16>
    %103 = vector.extract_strided_slice %92 {offsets = [5, 0, 0], sizes = [1, 8, 128], strides = [1, 1, 1]} : vector<12x8x128xbf16> to vector<1x8x128xbf16>
    %104 = vector.shape_cast %103 : vector<1x8x128xbf16> to vector<8x128xbf16>
    %105 = vector.extract_strided_slice %92 {offsets = [6, 0, 0], sizes = [1, 8, 128], strides = [1, 1, 1]} : vector<12x8x128xbf16> to vector<1x8x128xbf16>
    %106 = vector.shape_cast %105 : vector<1x8x128xbf16> to vector<8x128xbf16>
    %107 = vector.extract_strided_slice %92 {offsets = [7, 0, 0], sizes = [1, 8, 128], strides = [1, 1, 1]} : vector<12x8x128xbf16> to vector<1x8x128xbf16>
    %108 = vector.shape_cast %107 : vector<1x8x128xbf16> to vector<8x128xbf16>
    %109 = vector.extract_strided_slice %92 {offsets = [8, 0, 0], sizes = [1, 8, 128], strides = [1, 1, 1]} : vector<12x8x128xbf16> to vector<1x8x128xbf16>
    %110 = vector.shape_cast %109 : vector<1x8x128xbf16> to vector<8x128xbf16>
    %111 = vector.extract_strided_slice %92 {offsets = [9, 0, 0], sizes = [1, 8, 128], strides = [1, 1, 1]} : vector<12x8x128xbf16> to vector<1x8x128xbf16>
    %112 = vector.shape_cast %111 : vector<1x8x128xbf16> to vector<8x128xbf16>
    %113 = vector.extract_strided_slice %92 {offsets = [10, 0, 0], sizes = [1, 8, 128], strides = [1, 1, 1]} : vector<12x8x128xbf16> to vector<1x8x128xbf16>
    %114 = vector.shape_cast %113 : vector<1x8x128xbf16> to vector<8x128xbf16>
    %115 = vector.extract_strided_slice %92 {offsets = [11, 0, 0], sizes = [1, 8, 128], strides = [1, 1, 1]} : vector<12x8x128xbf16> to vector<1x8x128xbf16>
    %116 = vector.shape_cast %115 : vector<1x8x128xbf16> to vector<8x128xbf16>
    %117 = tpu.concatenate %94, %96, %98, %100, %102, %104, %106, %108, %110, %112, %114, %116 in 1 : vector<8x128xbf16>, vector<8x128xbf16>, vector<8x128xbf16>, vector<8x128xbf16>, vector<8x128xbf16>, vector<8x128xbf16>, vector<8x128xbf16>, vector<8x128xbf16>, vector<8x128xbf16>, vector<8x128xbf16>, vector<8x128xbf16>, vector<8x128xbf16> -> vector<8x1536xbf16>
    %c0_34 = arith.constant 0 : index
    %c0_35 = arith.constant 0 : index
    %118 = vector.load %arg8[%c0_34, %c0_35] : memref<1536x128xbf16, #tpu.memory_space<vmem>>, vector<1536x128xbf16>
    %cst_36 = arith.constant dense<0.000000e+00> : vector<8x128xf32>
    %119 = tpu.matmul %117, %118, %cst_36 {dimension_numbers = #tpu.dot_dimension_numbers<[1], [0], [0], [1], [0, 0, 1, 1], [], []>} : vector<8x1536xbf16>, vector<1536x128xbf16>, vector<8x128xf32> -> vector<8x128xf32>
    %c0_37 = arith.constant 0 : index
    %c0_38 = arith.constant 0 : index
    %120 = vector.load %arg9[%c0_37, %c0_38] : memref<1x128xf32, #tpu.memory_space<vmem>>, vector<1x128xf32>
    %121 = vector.broadcast %120 : vector<1x128xf32> to vector<8x128xf32>
    %122 = arith.addf %119, %121 : vector<8x128xf32>
    %cst_39 = arith.constant 0.000000e+00 : f32
    %123 = vector.broadcast %cst_39 : f32 to vector<8x128xf32>
    %124 = arith.maximumf %122, %123 : vector<8x128xf32>
    %125 = arith.truncf %124 : vector<8x128xf32> to vector<8x128xbf16>
    %c0_40 = arith.constant 0 : index
    %c0_41 = arith.constant 0 : index
    %126 = vector.load %arg10[%c0_40, %c0_41] : memref<128x128xbf16, #tpu.memory_space<vmem>>, vector<128x128xbf16>
    %cst_42 = arith.constant dense<0.000000e+00> : vector<8x128xf32>
    %127 = tpu.matmul %125, %126, %cst_42 {dimension_numbers = #tpu.dot_dimension_numbers<[1], [0], [0], [1], [0, 0, 1, 1], [], []>} : vector<8x128xbf16>, vector<128x128xbf16>, vector<8x128xf32> -> vector<8x128xf32>
    %c0_43 = arith.constant 0 : index
    %c0_44 = arith.constant 0 : index
    %128 = vector.load %arg11[%c0_43, %c0_44] : memref<1x128xf32, #tpu.memory_space<vmem>>, vector<1x128xf32>
    %129 = vector.broadcast %128 : vector<1x128xf32> to vector<8x128xf32>
    %130 = arith.addf %127, %129 : vector<8x128xf32>
    %c0_45 = arith.constant 0 : index
    %c0_46 = arith.constant 0 : index
    %131 = vector.load %arg12[%c0_45, %c0_46] : memref<8x128xf32, #tpu.memory_space<vmem>>, vector<8x128xf32>
    tpu.vector_store %arg12[%c0_45, %c0_46], %130 {strides = array<i32>} : memref<8x128xf32, #tpu.memory_space<vmem>>, vector<8x128xf32>,
    return
  }
  func.func @transform_0(%arg0: i32) -> (i32, i32) {
    %c0_i32 = arith.constant 0 : i32
    %c0_i32_0 = arith.constant 0 : i32
    return %c0_i32, %arg0 : i32, i32
  }
  func.func @transform_1(%arg0: i32) -> (i32, i32) {
    %c0_i32 = arith.constant 0 : i32
    %c0_i32_0 = arith.constant 0 : i32
    %c0_i32_1 = arith.constant 0 : i32
    return %c0_i32, %c0_i32_0 : i32, i32
  }
  func.func @transform_2(%arg0: i32) -> (i32, i32) {
    %c0_i32 = arith.constant 0 : i32
    %c0_i32_0 = arith.constant 0 : i32
    %c0_i32_1 = arith.constant 0 : i32
    return %c0_i32, %c0_i32_0 : i32, i32
  }
  func.func @transform_3(%arg0: i32) -> (i32, i32, i32) {
    %c0_i32 = arith.constant 0 : i32
    %c0_i32_0 = arith.constant 0 : i32
    %c0_i32_1 = arith.constant 0 : i32
    %c0_i32_2 = arith.constant 0 : i32
    return %c0_i32, %c0_i32_0, %c0_i32_1 : i32, i32, i32
  }
  func.func @transform_4(%arg0: i32) -> (i32, i32) {
    %c0_i32 = arith.constant 0 : i32
    %c0_i32_0 = arith.constant 0 : i32
    %c0_i32_1 = arith.constant 0 : i32
    return %c0_i32, %c0_i32_0 : i32, i32
  }
  func.func @transform_5(%arg0: i32) -> (i32, i32, i32) {
    %c0_i32 = arith.constant 0 : i32
    %c0_i32_0 = arith.constant 0 : i32
    %c0_i32_1 = arith.constant 0 : i32
    %c0_i32_2 = arith.constant 0 : i32
    return %c0_i32, %c0_i32_0, %c0_i32_1 : i32, i32, i32
  }
  func.func @transform_6(%arg0: i32) -> (i32, i32) {
    %c0_i32 = arith.constant 0 : i32
    %c0_i32_0 = arith.constant 0 : i32
    %c0_i32_1 = arith.constant 0 : i32
    return %c0_i32, %c0_i32_0 : i32, i32
  }
  func.func @transform_7(%arg0: i32) -> (i32, i32) {
    %c0_i32 = arith.constant 0 : i32
    %c0_i32_0 = arith.constant 0 : i32
    %c0_i32_1 = arith.constant 0 : i32
    return %c0_i32, %c0_i32_0 : i32, i32
  }
  func.func @transform_8(%arg0: i32) -> (i32, i32) {
    %c0_i32 = arith.constant 0 : i32
    %c0_i32_0 = arith.constant 0 : i32
    %c0_i32_1 = arith.constant 0 : i32
    return %c0_i32, %c0_i32_0 : i32, i32
  }
  func.func @transform_9(%arg0: i32) -> (i32, i32) {
    %c0_i32 = arith.constant 0 : i32
    %c0_i32_0 = arith.constant 0 : i32
    %c0_i32_1 = arith.constant 0 : i32
    return %c0_i32, %c0_i32_0 : i32, i32
  }
  func.func @transform_10(%arg0: i32) -> (i32, i32) {
    %c0_i32 = arith.constant 0 : i32
    %c0_i32_0 = arith.constant 0 : i32
    %c0_i32_1 = arith.constant 0 : i32
    return %c0_i32, %c0_i32_0 : i32, i32
  }
  func.func @transform_11(%arg0: i32) -> (i32, i32) {
    %c0_i32 = arith.constant 0 : i32
    %c0_i32_0 = arith.constant 0 : i32
    return %arg0, %c0_i32 : i32, i32
  }
}

</mosaic_0001>

<bundles_post_ra>
// kernel: tpu_custom_call.1
= control target key start
LH: loop header
LB: loop body
LE: loop exit
PB: predicated region body
PF: predicated region fallthrough
CT: control target
= control target key end

     0   :  { %16 = vsyncpa [#allocation3], 0  ;;  %s5408_s0 = inlined_call_operand.vmem [shape: f32[30,8], index: 0, kind: input, shape index: {}]   ;;  %s5409_s1 = inlined_call_operand.vmem [shape: f32[3,128], index: 1, kind: input, shape index: {}]   ;;  %s5410_s2 = inlined_call_operand.vmem [shape: f32[1,128], index: 2, kind: input, shape index: {}]   ;;  %s5411_s3 = inlined_call_operand.hbm [shape: bf16[3,128,128], index: 3, kind: input, shape index: {}]   ;;  %s5412_s4 = inlined_call_operand.vmem [shape: f32[1,128], index: 4, kind: input, shape index: {}]   ;;  %s5413_s5 = inlined_call_operand.hbm [shape: bf16[3,128,128], index: 5, kind: input, shape index: {}]   ;;  %s5414_s6 = inlined_call_operand.vmem [shape: f32[1,128], index: 6, kind: input, shape index: {}]   ;;  %s5415_s7 = inlined_call_operand.hbm [shape: bf16[1536,128], index: 7, kind: input, shape index: {}]   ;;  %s5416_s8 = inlined_call_operand.vmem [shape: f32[1,128], index: 8, kind: input, shape index: {}]   ;;  %s5417_s9 = inlined_call_operand.vmem [shape: bf16[128,128], index: 9, kind: input, shape index: {}]   ;;  %s5418_s10 = inlined_call_operand.vmem [shape: f32[1,128], index: 10, kind: input, shape index: {}]   ;;  %s5419_s11 = inlined_call_operand.hbm [shape: f32[8,128], index: 11, kind: output, shape index: {}]  }
   0x1   :  { %17 = vsyncpa [#allocation6], 0 }
   0x2   :  { %18 = vsyncpa [#allocation4], 0  ;;  %s4683_s17 = smov [#allocation5]   ;;  %s4684_s19 = smov [#allocation2]  }
   0x3   :  { %s44_s18 = sshll.u32 %s4683_s17, 4  ;;  %s30_s20 = sshll.u32 %s4684_s19, 4  ;;  %s45_s18 = int_to_ptr.vmem [resolvable:$true] %s44_s18  ;;  %s4751_s20 = int_to_ptr.vmem [resolvable:$true] %s30_s20 }
   0x4   :  { %s4589_s23 = scalar_lea.hbm %s5413_s5, 3072 }
   0x5   :  { %p4590_p0 = scmp.ne.s32.totalorder %s5413_s5, %s4589_s23  ;;  %p4593_p1 = scmp.lt.u32.totalorder %s4589_s23, %s5413_s5 }
   0x7   :  { %p4595_p2 = pnand %p4593_p1, %p4590_p0 }
   0x9   :  { %4598 = shalt.err (!%p4595_p2)
}
   0xa   :  { %s4599_s28 = scalar_lea.vmem %s45_s18, 3072  ;;  %p4604_p4 = scmp.lt.s32.totalorder %s45_s18, %s45_s18 }
   0xb   :  { %p4600_p3 = scmp.ne.s32.totalorder %s45_s18, %s4599_s28  ;;  %p4605_p5 = scmp.lt.s32.totalorder %s4599_s28, %s4599_s28 }
   0xd   :  { %p4606_p6 = por %p4605_p5, %p4604_p4 }
   0xf   :  { %p4607_p7 = pnand %p4606_p6, %p4600_p3 }
  0x11   :  { %4610 = shalt.err (!%p4607_p7)
}
  0x12   :  { %s4685_s29 = smov 64   ;;  %s4686_s30 = smov 4  }
  0x13   :  { %50 = dma.hbm_to_vmem [thread:$0]  %s5413_s5, 3072, %s45_s18, [#allocation6], %s4685_s29, %s4685_s29, %s4686_s30  }
  0x14   :  { %s4611_s16 = scalar_lea.hbm %s5411_s3, 3072 }
  0x15   :  { %p4612_p8 = scmp.ne.s32.totalorder %s5411_s3, %s4611_s16  ;;  %p4615_p9 = scmp.lt.u32.totalorder %s4611_s16, %s5411_s3 }
  0x17   :  { %p4617_p10 = pnand %p4615_p9, %p4612_p8 }
  0x19   :  { %4620 = shalt.err (!%p4617_p10)
}
  0x1a   :  { %s4621_s23 = scalar_lea.vmem %s4751_s20, 3072  ;;  %p4626_p12 = scmp.lt.s32.totalorder %s4751_s20, %s4751_s20 }
  0x1b   :  { %p4622_p11 = scmp.ne.s32.totalorder %s4751_s20, %s4621_s23  ;;  %p4627_p13 = scmp.lt.s32.totalorder %s4621_s23, %s4621_s23 }
  0x1d   :  { %p4628_p0 = por %p4627_p13, %p4626_p12 }
  0x1f   :  { %p4629_p1 = pnand %p4628_p0, %p4622_p11 }
  0x21   :  { %4632 = shalt.err (!%p4629_p1)
}
  0x22   :  { %36 = dma.hbm_to_vmem [thread:$0]  %s5411_s3, 3072, %s4751_s20, [#allocation3], %s4685_s29, %s4685_s29, %s4686_s30  }
  0x23   :  { %s4687_s24 = smov [#allocation7]   ;;  %s4633_s28 = scalar_lea.hbm %s5415_s7, 12288 }
  0x24   :  { %s58_s25 = sshll.u32 %s4687_s24, 4  ;;  %p4634_p2 = scmp.ne.s32.totalorder %s5415_s7, %s4633_s28  ;;  %s59_s25 = int_to_ptr.vmem [resolvable:$true] %s58_s25 }
  0x25   :  { %p4637_p3 = scmp.lt.u32.totalorder %s4633_s28, %s5415_s7 }
  0x27   :  { %p4639_p4 = pnand %p4637_p3, %p4634_p2 }
  0x29   :  { %4642 = shalt.err (!%p4639_p4)
}
  0x2a   :  { %s4643_s16 = scalar_lea.vmem %s59_s25, 12288  ;;  %p4648_p6 = scmp.lt.s32.totalorder %s59_s25, %s59_s25 }
  0x2b   :  { %p4644_p5 = scmp.ne.s32.totalorder %s59_s25, %s4643_s16  ;;  %p4649_p7 = scmp.lt.s32.totalorder %s4643_s16, %s4643_s16 }
  0x2d   :  { %p4650_p8 = por %p4649_p7, %p4648_p6 }
  0x2f   :  { %p4651_p9 = pnand %p4650_p8, %p4644_p5 }
  0x31   :  { %4654 = shalt.err (!%p4651_p9)
}
  0x32   :  { %64 = dma.hbm_to_vmem [thread:$0]  %s5415_s7, 12288, %s59_s25, [#allocation6], %s4685_s29, %s4685_s29, %s4686_s30  }
  0x33   :  { %4677 = dma.done.wait [#allocation3], 3072  }
  0x34   :  { %4678 = vsyncadd [#allocation3], 4294964224 }
  0x35   :  { %4679 = dma.done.wait [#allocation6], 15360  }
  0x36   :  { %4680 = vsyncadd [#allocation6], 4294951936  ;;  %v93_v0 = vlaneseq  ;;  %v4688_v1 = vmov 0.0   ;;  %v81_v7 = vld [vmem:[%s5408_s0] sm:$0xff]  ;;  %v4438_v15 = vld [vmem:[#allocation2 + $0x8] sm:$0xff]   ;;  %vm4689_vm0 = vmmov 0  }
  0x37   :  { %3883 = vmatprep.subr.bf16.mxu0 %v4688_v1  ;;  %v4437_v11 = vld [vmem:[#allocation2] sm:$0xff]   ;;  %v4439_v20 = vld [vmem:[#allocation2 + $0x10] sm:$0xff]   ;;  %3899 = vmatprep.mubr.msk.bf16.mxu0 %vm4689_vm0, %v4688_v1  ;;  %v82_v23 = vld [vmem:[%s5408_s0 + $0x8] sm:$0xff]  ;;  %s4690_s23 = smov [#allocation8]  }
  0x38   :  { %v94_v2 = vshrl.u32 %v93_v0, 7  ;;  %3884 = vmatpush3.bf16.msra.mxu0 %v4437_v11  ;;  %v4440_v24 = vld [vmem:[#allocation2 + $0x18] sm:$0xff]   ;;  %v4441_v27 = vld [vmem:[#allocation2 + $0x20] sm:$0xff]   ;;  %v4442_v28 = vld [vmem:[#allocation2 + $0x28] sm:$0xff]  }
  0x39   :  { %3885 = vmatprep.subr.bf16.mxu0 %v4688_v1  ;;  %v4443_v31 = vld [vmem:[#allocation2 + $0x30] sm:$0xff]   ;;  %v4444_v35 = vld [vmem:[#allocation2 + $0x38] sm:$0xff]   ;;  %v85_v53 = vld [vmem:[%s5409_s1] sm:$0x7] }
  0x3a   :  { %v4804_v3 = vsub.s32 0, %v94_v2  ;;  %v4806_v4 = vsub.s32 2, %v94_v2  ;;  %v4808_v5 = vsub.s32 1, %v94_v2  ;;  %v4810_v6 = vsub.s32 3, %v94_v2  ;;  %v83_v34 = vld [vmem:[%s5408_s0 + $0x10] sm:$0xff] }
  0x3b   :  { %v4817_v10 = vsub.s32 4, %v94_v2  ;;  %v4821_v14 = vsub.s32 5, %v94_v2  ;;  %v4824_v16 = vsub.s32 6, %v94_v2  ;;  %v4826_v17 = vsub.s32 7, %v94_v2  ;;  %v84_v44 = vld [vmem:[%s5408_s0 + $0x18] sm:$0x3f] }
  0x3c   :  { %v96_v8 = vrot.slane %v81_v7, %v4804_v3  ;;  %v110_v9 = vrot.slane %v81_v7, %v4806_v4  ;;  %v103_v12 = vrot.slane %v81_v7, %v4808_v5  ;;  %v117_v13 = vrot.slane %v81_v7, %v4810_v6  ;;  %3886 = vmatpush3.bf16.msra.mxu0 %v4438_v15  ;;  %v4884_v58 = vld [vmem:[%s5410_s2] ss:$0 sm:$0xff]  ;;  %s3348_s0 = sshll.u32 %s4690_s23, 4  ;;  %s3349_s0 = int_to_ptr.vmem [resolvable:$true] %s3348_s0 }
  0x3d   :  { %v124_v18 = vrot.slane %v81_v7, %v4817_v10  ;;  %v131_v19 = vrot.slane %v81_v7, %v4821_v14  ;;  %3887 = vmatprep.subr.bf16.mxu0 %v4688_v1  ;;  %v138_v21 = vrot.slane %v81_v7, %v4824_v16  ;;  %v145_v22 = vrot.slane %v81_v7, %v4826_v17  ;;  %s4655_s5 = scalar_lea.vmem %s3349_s0, 128  ;;  %p4660_p11 = scmp.lt.s32.totalorder %s3349_s0, %s3349_s0 }
  0x3e   :  { %98 = vbcast.lane.b32.xlu0 %v96_v8, 256  ;;  %112 = vbcast.lane.b32.xlu1 %v110_v9, 256  ;;  %v152_v25 = vrot.slane %v82_v23, %v4804_v3  ;;  %v159_v26 = vrot.slane %v82_v23, %v4808_v5  ;;  %v166_v29 = vrot.slane %v82_v23, %v4806_v4  ;;  %p4656_p10 = scmp.ne.s32.totalorder %s3349_s0, %s4655_s5  ;;  %p4661_p12 = scmp.lt.s32.totalorder %s4655_s5, %s4655_s5 }
  0x3f   :  { %v173_v30 = vrot.slane %v82_v23, %v4810_v6  ;;  %v180_v32 = vrot.slane %v82_v23, %v4817_v10  ;;  %v187_v33 = vrot.slane %v82_v23, %v4821_v14  ;;  %v194_v36 = vrot.slane %v82_v23, %v4824_v16 }
  0x40   :  { %3888 = vmatpush3.bf16.msra.mxu0 %v4439_v20  ;;  %v201_v37 = vrot.slane %v82_v23, %v4826_v17  ;;  %v208_v38 = vrot.slane %v83_v34, %v4804_v3  ;;  %v215_v39 = vrot.slane %v83_v34, %v4808_v5  ;;  %v222_v40 = vrot.slane %v83_v34, %v4806_v4  ;;  %p4662_p13 = por %p4661_p12, %p4660_p11 }
  0x41   :  { %3889 = vmatprep.subr.bf16.mxu0 %v4688_v1  ;;  %v229_v41 = vrot.slane %v83_v34, %v4810_v6  ;;  %v236_v42 = vrot.slane %v83_v34, %v4817_v10  ;;  %v243_v43 = vrot.slane %v83_v34, %v4821_v14  ;;  %v250_v45 = vrot.slane %v83_v34, %v4824_v16 }
  0x42   :  { %105 = vbcast.lane.b32.xlu0 %v103_v12, 256  ;;  %119 = vbcast.lane.b32.xlu1 %v117_v13, 256  ;;  %v257_v46 = vrot.slane %v83_v34, %v4826_v17  ;;  %v264_v47 = vrot.slane %v84_v44, %v4804_v3  ;;  %v271_v48 = vrot.slane %v84_v44, %v4808_v5  ;;  %p4663_p0 = pnand %p4662_p13, %p4656_p10 }
  0x43   :  { %v278_v49 = vrot.slane %v84_v44, %v4806_v4  ;;  %v285_v50 = vrot.slane %v84_v44, %v4810_v6  ;;  %v352_v51 = vrot.slane %v84_v44, %v4817_v10  ;;  %v419_v52 = vrot.slane %v84_v44, %v4821_v14 }
  0x44   :  { %3890 = vmatpush3.bf16.msra.mxu0 %v4440_v24  ;;  %v4876_v54 = vrot.slane %v85_v53, %v4804_v3  ;;  %v4879_v57 = vrot.slane %v85_v53, %v4808_v5  ;;  %v4889_v61 = vrot.slane %v85_v53, %v4806_v4 }
  0x45   :  { %3891 = vmatprep.subr.bf16.mxu0 %v4688_v1 }
  0x46   :  { %126 = vbcast.lane.b32.xlu0 %v124_v18, 256  ;;  %133 = vbcast.lane.b32.xlu1 %v131_v19, 256 }
  0x48   :  { %3892 = vmatpush3.bf16.msra.mxu0 %v4441_v27 }
  0x49   :  { %3893 = vmatprep.subr.bf16.mxu0 %v4688_v1 }
  0x4a   :  { %140 = vbcast.lane.b32.xlu0 %v138_v21, 256  ;;  %147 = vbcast.lane.b32.xlu1 %v145_v22, 256 }
  0x4c   :  { %3894 = vmatpush3.bf16.msra.mxu0 %v4442_v28 }
  0x4d   :  { %3895 = vmatprep.subr.bf16.mxu0 %v4688_v1 }
  0x4e   :  { %154 = vbcast.lane.b32.xlu0 %v152_v25, 256  ;;  %161 = vbcast.lane.b32.xlu1 %v159_v26, 256 }
  0x50   :  { %3896 = vmatpush3.bf16.msra.mxu0 %v4443_v31 }
  0x51   :  { %3897 = vmatprep.subr.bf16.mxu0 %v4688_v1 }
  0x52   :  { %168 = vbcast.lane.b32.xlu0 %v166_v29, 256  ;;  %175 = vbcast.lane.b32.xlu1 %v173_v30, 256 }
  0x54   :  { %3898 = vmatpush3.bf16.msra.mxu0 %v4444_v35 }
  0x55   :  { %3951 = vmatprep.subr.bf16.mxu0 %v4688_v1 }
  0x56   :  { %182 = vbcast.lane.b32.xlu0 %v180_v32, 256  ;;  %189 = vbcast.lane.b32.xlu1 %v187_v33, 256 }
  0x5a   :  { %196 = vbcast.lane.b32.xlu0 %v194_v36, 256  ;;  %203 = vbcast.lane.b32.xlu1 %v201_v37, 256 }
  0x5e   :  { %210 = vbcast.lane.b32.xlu0 %v208_v38, 256  ;;  %217 = vbcast.lane.b32.xlu1 %v215_v39, 256 }
  0x62   :  { %224 = vbcast.lane.b32.xlu0 %v222_v40, 256  ;;  %231 = vbcast.lane.b32.xlu1 %v229_v41, 256 }
  0x66   :  { %238 = vbcast.lane.b32.xlu0 %v236_v42, 256  ;;  %245 = vbcast.lane.b32.xlu1 %v243_v43, 256  ;;  %v4445_v42 = vld [vmem:[#allocation2 + $0x40] sm:$0xff]  }
  0x6a   :  { %252 = vbcast.lane.b32.xlu0 %v250_v45, 256  ;;  %259 = vbcast.lane.b32.xlu1 %v257_v46, 256 }
  0x6e   :  { %266 = vbcast.lane.b32.xlu0 %v264_v47, 256  ;;  %273 = vbcast.lane.b32.xlu1 %v271_v48, 256 }
  0x72   :  { %280 = vbcast.lane.b32.xlu0 %v278_v49, 256  ;;  %287 = vbcast.lane.b32.xlu1 %v285_v50, 256 }
  0x76   :  { %354 = vbcast.lane.b32.xlu0 %v352_v51, 256  ;;  %421 = vbcast.lane.b32.xlu1 %v419_v52, 256 }
  0xb0   :  { %v99_v55 = vpop.permute.xlu0 %98  ;;  %v113_v56 = vpop.permute.xlu1 %112 }
  0xb1   :  { %v293_v59 = vmul.f32 %v4876_v54, %v99_v55  ;;  %v295_v60 = vmul.f32 %v4876_v54, %v113_v56  ;;  %v361_v8 = vmul.f32 %v4879_v57, %v113_v56  ;;  %v427_v9 = vmul.f32 %v4889_v61, %v113_v56 }
  0xb3   :  { %v323_v62 = vadd.f32 %v4884_v58, %v295_v60  ;;  %v321_v63 = vadd.f32 %v4884_v58, %v293_v59 }
  0xb4   :  { %v106_v0 = vpop.permute.xlu0 %105  ;;  %v120_v2 = vpop.permute.xlu1 %119 }
  0xb5   :  { %v294_v3 = vmul.f32 %v4876_v54, %v106_v0  ;;  %v360_v5 = vmul.f32 %v4879_v57, %v106_v0  ;;  %v296_v6 = vmul.f32 %v4876_v54, %v120_v2  ;;  %v362_v7 = vmul.f32 %v4879_v57, %v120_v2 }
  0xb6   :  { %v428_v4 = vmul.f32 %v4889_v61, %v120_v2 }
  0xb7   :  { %v322_v10 = vadd.f32 %v4884_v58, %v294_v3  ;;  %v388_v11 = vadd.f32 %v360_v5, %v321_v63  ;;  %v324_v12 = vadd.f32 %v4884_v58, %v296_v6  ;;  %v390_v13 = vadd.f32 %v362_v7, %v323_v62  ;;  %v4446_v3 = vld [vmem:[#allocation2 + $0x48] sm:$0xff]  }
  0xb8   :  { %v127_v14 = vpop.permute.xlu0 %126  ;;  %v134_v15 = vpop.permute.xlu1 %133 }
  0xb9   :  { %v389_v16 = vadd.f32 %v361_v8, %v322_v10  ;;  %v455_v17 = vadd.f32 %v427_v9, %v388_v11  ;;  %v297_v18 = vmul.f32 %v4876_v54, %v127_v14  ;;  %v363_v19 = vmul.f32 %v4879_v57, %v127_v14 }
  0xba   :  { %v429_v20 = vmul.f32 %v4889_v61, %v127_v14  ;;  %v298_v21 = vmul.f32 %v4876_v54, %v134_v15  ;;  %v364_v22 = vmul.f32 %v4879_v57, %v134_v15  ;;  %v430_v23 = vmul.f32 %v4889_v61, %v134_v15 }
  0xbb   :  { %v456_v24 = vadd.f32 %v428_v4, %v389_v16  ;;  %v325_v25 = vadd.f32 %v4884_v58, %v297_v18  ;;  %v391_v26 = vadd.f32 %v363_v19, %v324_v12  ;;  %v483_v30 = vmax.f32 %v455_v17, 0.0 }
  0xbc   :  { %v457_v27 = vadd.f32 %v429_v20, %v390_v13  ;;  %v326_v28 = vadd.f32 %v4884_v58, %v298_v21  ;;  %v141_v29 = vpop.permute.xlu0 %140  ;;  %v148_v31 = vpop.permute.xlu1 %147 }
  0xbd   :  { %v392_v32 = vadd.f32 %v364_v22, %v325_v25  ;;  %v458_v33 = vadd.f32 %v430_v23, %v391_v26  ;;  %v299_v34 = vmul.f32 %v4876_v54, %v141_v29  ;;  %v365_v35 = vmul.f32 %v4879_v57, %v141_v29  ;;  %v4447_v23 = vld [vmem:[#allocation2 + $0x50] sm:$0xff]  }
  0xbe   :  { %v431_v36 = vmul.f32 %v4889_v61, %v141_v29  ;;  %v484_v37 = vmax.f32 %v456_v24, 0.0  ;;  %v300_v38 = vmul.f32 %v4876_v54, %v148_v31  ;;  %v366_v39 = vmul.f32 %v4879_v57, %v148_v31 }
  0xbf   :  { %v327_v40 = vadd.f32 %v4884_v58, %v299_v34  ;;  %v393_v41 = vadd.f32 %v365_v35, %v326_v28  ;;  %v432_v43 = vmul.f32 %v4889_v61, %v148_v31  ;;  %v485_v44 = vmax.f32 %v457_v27, 0.0 }
  0xc0   :  { %v459_v45 = vadd.f32 %v431_v36, %v392_v32  ;;  %v3567_v46 = vpack.c.bf16 %v484_v37, %v483_v30  ;;  %v328_v47 = vadd.f32 %v4884_v58, %v300_v38  ;;  %v155_v48 = vpop.permute.xlu0 %154  ;;  %v486_v49 = vmax.f32 %v458_v33, 0.0  ;;  %v162_v50 = vpop.permute.xlu1 %161 }
  0xc1   :  { %v394_v51 = vadd.f32 %v366_v39, %v327_v40  ;;  %v4918_v52 = vadd.f32 %v432_v43, %v393_v41  ;;  %v301_v53 = vmul.f32 %v4876_v54, %v155_v48  ;;  %v367_v55 = vmul.f32 %v4879_v57, %v155_v48 }
  0xc2   :  { %3900 = vmatmul.mubr.bf16.vlgmr.msra.gmra.mrb[0].mxu0 %v3567_v46  ;;  %v433_v56 = vmul.f32 %v4889_v61, %v155_v48  ;;  %v4923_v59 = vpack.c.bf16 %v486_v49, %v485_v44  ;;  %v4925_v60 = vpack.c.bf16 %v485_v44, %v484_v37  ;;  %v302_v62 = vmul.f32 %v4876_v54, %v162_v50 }
  0xc3   :  { %3952 = vmatpush3.bf16.msra.mxu0 %v4445_v42  ;;  %v329_v63 = vadd.f32 %v4884_v58, %v301_v53  ;;  %v395_v0 = vadd.f32 %v367_v55, %v328_v47  ;;  %3903 = vmatprep.mubr.msk.bf16.mxu0 %vm4689_vm0, %v4688_v1  ;;  %v368_v2 = vmul.f32 %v4879_v57, %v162_v50  ;;  %v487_v5 = vmax.f32 %v459_v45, 0.0  ;;  %v4448_v42 = vld [vmem:[#allocation2 + $0x58] sm:$0xff]  }
  0xc4   :  { %v461_v6 = vadd.f32 %v433_v56, %v394_v51  ;;  %v330_v7 = vadd.f32 %v4884_v58, %v302_v62  ;;  %v434_v8 = vmul.f32 %v4889_v61, %v162_v50  ;;  %v169_v9 = vpop.permute.xlu0 %168  ;;  %3953 = vmatprep.subr.bf16.mxu0 %v4688_v1  ;;  %v488_v4 = vmax.f32 %v4918_v52, 0.0  ;;  %v176_v10 = vpop.permute.xlu1 %175 }
  0xc5   :  { %v396_v11 = vadd.f32 %v368_v2, %v329_v63  ;;  %v303_v12 = vmul.f32 %v4876_v54, %v169_v9  ;;  %v369_v13 = vmul.f32 %v4879_v57, %v169_v9  ;;  %v435_v14 = vmul.f32 %v4889_v61, %v169_v9 }
  0xc6   :  { %v462_v15 = vadd.f32 %v434_v8, %v395_v0  ;;  %v4939_v16 = vpack.c.bf16 %v488_v4, %v487_v5  ;;  %v304_v17 = vmul.f32 %v4876_v54, %v176_v10  ;;  %v370_v18 = vmul.f32 %v4879_v57, %v176_v10 }
  0xc7   :  { %v331_v19 = vadd.f32 %v4884_v58, %v303_v12  ;;  %v397_v20 = vadd.f32 %v369_v13, %v330_v7  ;;  %v463_v21 = vadd.f32 %v435_v14, %v396_v11  ;;  %3954 = vmatpush3.bf16.msra.mxu0 %v4446_v3  ;;  %v436_v22 = vmul.f32 %v4889_v61, %v176_v10 }
  0xc8   :  { %v332_v24 = vadd.f32 %v4884_v58, %v304_v17  ;;  %v183_v25 = vpop.permute.xlu0 %182  ;;  %v489_v26 = vmax.f32 %v461_v6, 0.0  ;;  %v490_v27 = vmax.f32 %v462_v15, 0.0  ;;  %v190_v28 = vpop.permute.xlu1 %189  ;;  %3955 = vmatprep.subr.bf16.mxu0 %v4688_v1  ;;  %v4947_v29 = vpack.c.bf16 %v487_v5, %v486_v49  ;;  %v4449_v5 = vld [vmem:[#allocation2 + $0x60] sm:$0xff]  }
  0xc9   :  { %v398_v30 = vadd.f32 %v370_v18, %v331_v19  ;;  %v4949_v31 = vadd.f32 %v436_v22, %v397_v20  ;;  %v305_v32 = vmul.f32 %v4876_v54, %v183_v25  ;;  %v371_v33 = vmul.f32 %v4879_v57, %v183_v25 }
  0xca   :  { %3904 = vmatmul.mubr.bf16.gmra.mrb[4].mxu0 %v4923_v59  ;;  %v437_v34 = vmul.f32 %v4889_v61, %v183_v25  ;;  %v4955_v35 = vpack.c.bf16 %v490_v27, %v489_v26  ;;  %v306_v36 = vmul.f32 %v4876_v54, %v190_v28  ;;  %v372_v37 = vmul.f32 %v4879_v57, %v190_v28 }
  0xcb   :  { %3907 = vmatprep.mubr.msk.bf16.mxu0 %vm4689_vm0, %v4688_v1  ;;  %v333_v38 = vadd.f32 %v4884_v58, %v305_v32  ;;  %v399_v39 = vadd.f32 %v371_v33, %v332_v24  ;;  %v438_v40 = vmul.f32 %v4889_v61, %v190_v28  ;;  %3956 = vmatpush3.bf16.msra.mxu0 %v4447_v23  ;;  %v491_v41 = vmax.f32 %v463_v21, 0.0  ;;  %v4450_v24 = vld [vmem:[#allocation2 + $0x68] sm:$0xff]  }
  0xcc   :  { %v465_v43 = vadd.f32 %v437_v34, %v398_v30  ;;  %v334_v44 = vadd.f32 %v4884_v58, %v306_v36  ;;  %v197_v45 = vpop.permute.xlu0 %196  ;;  %v492_v46 = vmax.f32 %v4949_v31, 0.0  ;;  %v204_v47 = vpop.permute.xlu1 %203  ;;  %3957 = vmatprep.subr.bf16.mxu0 %v4688_v1  ;;  %v4966_v48 = vpack.c.bf16 %v489_v26, %v488_v4 }
  0xcd   :  { %v400_v49 = vadd.f32 %v372_v37, %v333_v38  ;;  %v4968_v50 = vadd.f32 %v438_v40, %v399_v39  ;;  %v307_v51 = vmul.f32 %v4876_v54, %v197_v45  ;;  %v373_v52 = vmul.f32 %v4879_v57, %v197_v45 }
  0xce   :  { %v439_v53 = vmul.f32 %v4889_v61, %v197_v45  ;;  %v4973_v55 = vpack.c.bf16 %v492_v46, %v491_v41  ;;  %v308_v56 = vmul.f32 %v4876_v54, %v204_v47  ;;  %v374_v62 = vmul.f32 %v4879_v57, %v204_v47  ;;  %v4451_v45 = vld [vmem:[#allocation2 + $0x70] sm:$0xff]  }
  0xcf   :  { %v335_v63 = vadd.f32 %v4884_v58, %v307_v51  ;;  %v401_v0 = vadd.f32 %v373_v52, %v334_v44  ;;  %v440_v2 = vmul.f32 %v4889_v61, %v204_v47  ;;  %3958 = vmatpush3.bf16.msra.mxu0 %v4448_v42  ;;  %v493_v3 = vmax.f32 %v465_v43, 0.0 }
  0xd0   :  { %v467_v6 = vadd.f32 %v439_v53, %v400_v49  ;;  %v336_v7 = vadd.f32 %v4884_v58, %v308_v56  ;;  %v211_v8 = vpop.permute.xlu0 %210  ;;  %v494_v9 = vmax.f32 %v4968_v50, 0.0  ;;  %v218_v4 = vpop.permute.xlu1 %217  ;;  %3959 = vmatprep.subr.bf16.mxu0 %v4688_v1  ;;  %v4982_v10 = vpack.c.bf16 %v491_v41, %v490_v27 }
  0xd1   :  { %v402_v11 = vadd.f32 %v374_v62, %v335_v63  ;;  %v4984_v12 = vadd.f32 %v440_v2, %v401_v0  ;;  %v309_v13 = vmul.f32 %v4876_v54, %v211_v8  ;;  %v375_v14 = vmul.f32 %v4879_v57, %v211_v8 }
  0xd2   :  { %3908 = vmatmul.mubr.bf16.gmra.mrb[8].mxu0 %v4939_v16  ;;  %v441_v15 = vmul.f32 %v4889_v61, %v211_v8  ;;  %v4990_v17 = vpack.c.bf16 %v494_v9, %v493_v3  ;;  %v310_v18 = vmul.f32 %v4876_v54, %v218_v4  ;;  %v376_v19 = vmul.f32 %v4879_v57, %v218_v4 }
  0xd3   :  { %3911 = vmatprep.mubr.msk.bf16.mxu0 %vm4689_vm0, %v4688_v1  ;;  %v337_v20 = vadd.f32 %v4884_v58, %v309_v13  ;;  %v403_v21 = vadd.f32 %v375_v14, %v336_v7  ;;  %v442_v22 = vmul.f32 %v4889_v61, %v218_v4  ;;  %v495_v23 = vmax.f32 %v467_v6, 0.0  ;;  %3960 = vmatpush3.bf16.msra.mxu0 %v4449_v5  ;;  %v4452_v4 = vld [vmem:[#allocation2 + $0x78] sm:$0xff]  }
  0xd4   :  { %v469_v25 = vadd.f32 %v441_v15, %v402_v11  ;;  %v338_v26 = vadd.f32 %v4884_v58, %v310_v18  ;;  %v225_v27 = vpop.permute.xlu0 %224  ;;  %v496_v28 = vmax.f32 %v4984_v12, 0.0  ;;  %v232_v30 = vpop.permute.xlu1 %231  ;;  %3961 = vmatprep.subr.bf16.mxu0 %v4688_v1  ;;  %v5001_v31 = vpack.c.bf16 %v493_v3, %v492_v46 }
  0xd5   :  { %v404_v32 = vadd.f32 %v376_v19, %v337_v20  ;;  %v5003_v33 = vadd.f32 %v442_v22, %v403_v21  ;;  %v311_v34 = vmul.f32 %v4876_v54, %v225_v27  ;;  %v377_v36 = vmul.f32 %v4879_v57, %v225_v27 }
  0xd6   :  { %v443_v37 = vmul.f32 %v4889_v61, %v225_v27  ;;  %v5008_v38 = vpack.c.bf16 %v496_v28, %v495_v23  ;;  %v312_v39 = vmul.f32 %v4876_v54, %v232_v30  ;;  %v378_v40 = vmul.f32 %v4879_v57, %v232_v30 }
  0xd7   :  { %v339_v41 = vadd.f32 %v4884_v58, %v311_v34  ;;  %v405_v42 = vadd.f32 %v377_v36, %v338_v26  ;;  %v444_v43 = vmul.f32 %v4889_v61, %v232_v30  ;;  %v497_v44 = vmax.f32 %v469_v25, 0.0  ;;  %3962 = vmatpush3.bf16.msra.mxu0 %v4450_v24 }
  0xd8   :  { %v471_v46 = vadd.f32 %v443_v37, %v404_v32  ;;  %v340_v47 = vadd.f32 %v4884_v58, %v312_v39  ;;  %v239_v49 = vpop.permute.xlu0 %238  ;;  %v498_v50 = vmax.f32 %v5003_v33, 0.0  ;;  %v246_v51 = vpop.permute.xlu1 %245  ;;  %3963 = vmatprep.subr.bf16.mxu0 %v4688_v1  ;;  %v5017_v52 = vpack.c.bf16 %v495_v23, %v494_v9 }
  0xd9   :  { %v406_v53 = vadd.f32 %v378_v40, %v339_v41  ;;  %v472_v56 = vadd.f32 %v444_v43, %v405_v42  ;;  %v313_v62 = vmul.f32 %v4876_v54, %v239_v49  ;;  %v379_v63 = vmul.f32 %v4879_v57, %v239_v49 }
  0xda   :  { %3912 = vmatmul.mubr.bf16.gmra.mrb[12].mxu0 %v4955_v35  ;;  %v445_v0 = vmul.f32 %v4889_v61, %v239_v49  ;;  %v5023_v2 = vpack.c.bf16 %v498_v50, %v497_v44  ;;  %v314_v3 = vmul.f32 %v4876_v54, %v246_v51  ;;  %v380_v5 = vmul.f32 %v4879_v57, %v246_v51 }
  0xdb   :  { %3915 = vmatprep.mubr.msk.bf16.mxu0 %vm4689_vm0, %v4688_v1  ;;  %v341_v6 = vadd.f32 %v4884_v58, %v313_v62  ;;  %v407_v7 = vadd.f32 %v379_v63, %v340_v47  ;;  %v446_v8 = vmul.f32 %v4889_v61, %v246_v51  ;;  %v499_v9 = vmax.f32 %v471_v46, 0.0  ;;  %3964 = vmatpush3.bf16.msra.mxu0 %v4451_v45 }
  0xdc   :  { %v473_v11 = vadd.f32 %v445_v0, %v406_v53  ;;  %v342_v12 = vadd.f32 %v4884_v58, %v314_v3  ;;  %v253_v13 = vpop.permute.xlu0 %252  ;;  %v500_v14 = vmax.f32 %v472_v56, 0.0  ;;  %v260_v15 = vpop.permute.xlu1 %259  ;;  %3965 = vmatprep.subr.bf16.mxu0 %v4688_v1  ;;  %v5033_v18 = vpack.c.bf16 %v497_v44, %v496_v28 }
  0xdd   :  { %v408_v19 = vadd.f32 %v380_v5, %v341_v6  ;;  %v474_v20 = vadd.f32 %v446_v8, %v407_v7  ;;  %v315_v21 = vmul.f32 %v4876_v54, %v253_v13  ;;  %v381_v22 = vmul.f32 %v4879_v57, %v253_v13 }
  0xde   :  { %v447_v23 = vmul.f32 %v4889_v61, %v253_v13  ;;  %v5038_v24 = vpack.c.bf16 %v500_v14, %v499_v9  ;;  %v316_v25 = vmul.f32 %v4876_v54, %v260_v15  ;;  %v382_v26 = vmul.f32 %v4879_v57, %v260_v15 }
  0xdf   :  { %v343_v27 = vadd.f32 %v4884_v58, %v315_v21  ;;  %v409_v30 = vadd.f32 %v381_v22, %v342_v12  ;;  %v448_v28 = vmul.f32 %v4889_v61, %v260_v15  ;;  %v501_v32 = vmax.f32 %v473_v11, 0.0  ;;  %3966 = vmatpush3.bf16.msra.mxu0 %v4452_v4 }
  0xe0   :  { %v475_v33 = vadd.f32 %v447_v23, %v408_v19  ;;  %v344_v34 = vadd.f32 %v4884_v58, %v316_v25  ;;  %v267_v36 = vpop.permute.xlu0 %266  ;;  %v502_v37 = vmax.f32 %v474_v20, 0.0  ;;  %v274_v39 = vpop.permute.xlu1 %273  ;;  %4019 = vmatprep.subr.bf16.mxu0 %v4688_v1  ;;  %v5046_v40 = vpack.c.bf16 %v499_v9, %v498_v50 }
  0xe1   :  { %v410_v41 = vadd.f32 %v382_v26, %v343_v27  ;;  %v476_v42 = vadd.f32 %v448_v28, %v409_v30  ;;  %v317_v43 = vmul.f32 %v4876_v54, %v267_v36  ;;  %v383_v44 = vmul.f32 %v4879_v57, %v267_v36 }
  0xe2   :  { %3916 = vmatmul.mubr.bf16.gmra.mrb[16].mxu0 %v4973_v55  ;;  %v449_v45 = vmul.f32 %v4889_v61, %v267_v36  ;;  %v5052_v46 = vpack.c.bf16 %v502_v37, %v501_v32  ;;  %v318_v47 = vmul.f32 %v4876_v54, %v274_v39  ;;  %v384_v49 = vmul.f32 %v4879_v57, %v274_v39 }
  0xe3   :  { %3919 = vmatprep.mubr.msk.bf16.mxu0 %vm4689_vm0, %v4688_v1  ;;  %v345_v50 = vadd.f32 %v4884_v58, %v317_v43  ;;  %v411_v51 = vadd.f32 %v383_v44, %v344_v34  ;;  %v450_v53 = vmul.f32 %v4889_v61, %v274_v39  ;;  %v503_v56 = vmax.f32 %v475_v33, 0.0 }
  0xe4   :  { %v477_v62 = vadd.f32 %v449_v45, %v410_v41  ;;  %v346_v63 = vadd.f32 %v4884_v58, %v318_v47  ;;  %v281_v0 = vpop.permute.xlu0 %280  ;;  %v504_v3 = vmax.f32 %v476_v42, 0.0  ;;  %v288_v5 = vpop.permute.xlu1 %287  ;;  %v5061_v6 = vpack.c.bf16 %v501_v32, %v500_v14 }
  0xe5   :  { %v412_v7 = vadd.f32 %v384_v49, %v345_v50  ;;  %v478_v8 = vadd.f32 %v450_v53, %v411_v51  ;;  %v319_v9 = vmul.f32 %v4876_v54, %v281_v0  ;;  %v385_v4 = vmul.f32 %v4879_v57, %v281_v0  ;;  %v4454_v51 = vld [vmem:[#allocation2 + $0x88] sm:$0xff]   ;;  %v4455_v53 = vld [vmem:[#allocation2 + $0x90] sm:$0xff]  }
  0xe6   :  { %v451_v11 = vmul.f32 %v4889_v61, %v281_v0  ;;  %v5066_v12 = vpack.c.bf16 %v504_v3, %v503_v56  ;;  %v320_v13 = vmul.f32 %v4876_v54, %v288_v5  ;;  %v386_v15 = vmul.f32 %v4879_v57, %v288_v5 }
  0xe7   :  { %v347_v19 = vadd.f32 %v4884_v58, %v319_v9  ;;  %v413_v20 = vadd.f32 %v385_v4, %v346_v63  ;;  %v452_v14 = vmul.f32 %v4889_v61, %v288_v5  ;;  %v505_v21 = vmax.f32 %v477_v62, 0.0  ;;  %v4458_v62 = vld [vmem:[#allocation2 + $0xa8] sm:$0xff]   ;;  %v4460_v63 = vld [vmem:[#allocation2 + $0xb8] sm:$0xff]  }
  0xe8   :  { %v479_v22 = vadd.f32 %v451_v11, %v412_v7  ;;  %v348_v23 = vadd.f32 %v4884_v58, %v320_v13  ;;  %v355_v25 = vpop.permute.xlu0 %354  ;;  %v506_v26 = vmax.f32 %v478_v8, 0.0  ;;  %v422_v27 = vpop.permute.xlu1 %421  ;;  %v5073_v30 = vpack.c.bf16 %v503_v56, %v502_v37  ;;  %v4456_v56 = vld [vmem:[#allocation2 + $0x98] sm:$0xff]  }
  0xe9   :  { %v480_v28 = vadd.f32 %v452_v14, %v413_v20  ;;  %v414_v32 = vadd.f32 %v386_v15, %v347_v19  ;;  %v387_v54 = vmul.f32 %v4879_v57, %v355_v25  ;;  %v453_v33 = vmul.f32 %v4889_v61, %v355_v25  ;;  %v4470_v14 = vld [vmem:[#allocation5 + $0x48] sm:$0xff]  }
  0xea   :  { %3920 = vmatmul.mubr.bf16.gmra.mrb[20].mxu0 %v4990_v17  ;;  %v5078_v34 = vpack.c.bf16 %v506_v26, %v505_v21  ;;  %v454_v36 = vmul.f32 %v4889_v61, %v422_v27  ;;  %v507_v39 = vmax.f32 %v479_v22, 0.0  ;;  %v5081_v41 = vpack.c.bf16 %v505_v21, %v504_v3  ;;  %v4453_v61 = vld [vmem:[#allocation2 + $0x80] sm:$0xff]  }
  0xeb   :  { %3923 = vmatprep.mubr.msk.bf16.mxu0 %vm4689_vm0, %v4688_v1  ;;  %v415_v58 = vadd.f32 %v387_v54, %v348_v23  ;;  %v481_v37 = vadd.f32 %v453_v33, %v414_v32  ;;  %v508_v42 = vmax.f32 %v480_v28, 0.0  ;;  %v4471_v28 = vld [vmem:[#allocation5 + $0x50] sm:$0xff]  }
  0xec   :  { %v5085_v43 = vpack.c.bf16 %v507_v39, %v506_v26 }
  0xed   :  { %v509_v57 = vmax.f32 %v481_v37, 0.0  ;;  %v482_v44 = vadd.f32 %v454_v36, %v415_v58  ;;  %v5087_v45 = vpack.c.bf16 %v508_v42, %v507_v39 }
  0xef   :  { %v510_v47 = vmax.f32 %v482_v44, 0.0  ;;  %v5089_v49 = vpack.c.bf16 %v509_v57, %v508_v42 }
  0xf1   :  { %v5091_v50 = vpack.c.bf16 %v510_v47, %v509_v57  ;;  %v4473_v57 = vld [vmem:[#allocation5 + $0x60] sm:$0xff]  }
  0xf2   :  { %3924 = vmatmul.mubr.bf16.gmra.mrb[24].mxu0 %v5008_v38 }
  0xf3   :  { %3927 = vmatprep.mubr.msk.bf16.mxu0 %vm4689_vm0, %v4688_v1 }
  0xfa   :  { %3928 = vmatmul.mubr.bf16.gmra.mrb[28].mxu0 %v5023_v2 }
  0xfb   :  { %3931 = vmatprep.mubr.msk.bf16.mxu0 %vm4689_vm0, %v4688_v1 }
 0x102   :  { %3932 = vmatmul.mubr.bf16.gmra.mrb[32].mxu0 %v5038_v24 }
 0x103   :  { %3935 = vmatprep.mubr.msk.bf16.mxu0 %vm4689_vm0, %v4688_v1 }
 0x10a   :  { %3936 = vmatmul.mubr.bf16.gmra.mrb[36].mxu0 %v5052_v46 }
 0x10b   :  { %3939 = vmatprep.mubr.msk.bf16.mxu0 %vm4689_vm0, %v4688_v1 }
 0x112   :  { %3940 = vmatmul.mubr.bf16.gmra.mrb[40].mxu0 %v5066_v12 }
 0x113   :  { %3943 = vmatprep.mubr.msk.bf16.mxu0 %vm4689_vm0, %v4688_v1 }
 0x11a   :  { %3944 = vmatmul.mubr.bf16.gmra.mrb[44].mxu0 %v5078_v34 }
 0x11b   :  { %3947 = vmatprep.mubr.msk.bf16.mxu0 %vm4689_vm0, %v4688_v1 }
 0x122   :  { %3948 = vmatmul.mubr.bf16.gmra.mrb[48].mxu0 %v5087_v45 }
 0x123   :  { %3967 = vmatprep.mubr.msk.bf16.mxu0 %vm4689_vm0, %v4688_v1 }
 0x12a   :  { %3968 = vmatmul.mubr.bf16.vlgmr.msra.gmra.mrb[0].mxu0 %v4925_v60  ;;  %v4457_v60 = vld [vmem:[#allocation2 + $0xa0] sm:$0xff]  }
 0x12b   :  { %4020 = vmatpush3.bf16.msra.mxu0 %v4453_v61  ;;  %3971 = vmatprep.mubr.msk.bf16.mxu0 %vm4689_vm0, %v4688_v1 }
 0x12c   :  { %4021 = vmatprep.subr.bf16.mxu0 %v4688_v1 }
 0x12f   :  { %4022 = vmatpush3.bf16.msra.mxu0 %v4454_v51 }
 0x130   :  { %4023 = vmatprep.subr.bf16.mxu0 %v4688_v1 }
 0x132   :  { %3972 = vmatmul.mubr.bf16.gmra.mrb[4].mxu0 %v4947_v29  ;;  %v4459_v29 = vld [vmem:[#allocation2 + $0xb0] sm:$0xff]  }
 0x133   :  { %3975 = vmatprep.mubr.msk.bf16.mxu0 %vm4689_vm0, %v4688_v1  ;;  %4024 = vmatpush3.bf16.msra.mxu0 %v4455_v53 }
 0x134   :  { %4025 = vmatprep.subr.bf16.mxu0 %v4688_v1 }
 0x137   :  { %4026 = vmatpush3.bf16.msra.mxu0 %v4456_v56 }
 0x138   :  { %4027 = vmatprep.subr.bf16.mxu0 %v4688_v1 }
 0x13a   :  { %3976 = vmatmul.mubr.bf16.gmra.mrb[8].mxu0 %v4966_v48  ;;  %v4461_v48 = vld [vmem:[#allocation5] sm:$0xff]  }
 0x13b   :  { %3979 = vmatprep.mubr.msk.bf16.mxu0 %vm4689_vm0, %v4688_v1  ;;  %4028 = vmatpush3.bf16.msra.mxu0 %v4457_v60 }
 0x13c   :  { %4029 = vmatprep.subr.bf16.mxu0 %v4688_v1  ;;  %4087 = vmatprep.subr.bf16.mxu1 %v4461_v48 }
 0x13d   :  { %4088 = vmatpush3.bf16.msra.mxu1 %v4461_v48 }
 0x13f   :  { %4030 = vmatpush3.bf16.msra.mxu0 %v4458_v62 }
 0x140   :  { %4031 = vmatprep.subr.bf16.mxu0 %v4688_v1 }
 0x142   :  { %3980 = vmatmul.mubr.bf16.gmra.mrb[12].mxu0 %v4982_v10  ;;  %v4462_v10 = vld [vmem:[#allocation5 + $0x8] sm:$0xff]  }
 0x143   :  { %3983 = vmatprep.mubr.msk.bf16.mxu0 %vm4689_vm0, %v4688_v1  ;;  %4032 = vmatpush3.bf16.msra.mxu0 %v4459_v29  ;;  %v4475_v29 = vld [vmem:[#allocation5 + $0x70] sm:$0xff]  }
 0x144   :  { %4033 = vmatprep.subr.bf16.mxu0 %v4688_v1  ;;  %4089 = vmatprep.subr.bf16.mxu1 %v4462_v10 }
 0x145   :  { %4090 = vmatpush3.bf16.msra.mxu1 %v4462_v10 }
 0x147   :  { %4034 = vmatpush3.bf16.msra.mxu0 %v4460_v63 }
 0x148   :  { %4207 = vmatprep.subr.bf16.mxu0 %v4688_v1 }
 0x14a   :  { %3984 = vmatmul.mubr.bf16.gmra.mrb[16].mxu0 %v5001_v31  ;;  %v4463_v31 = vld [vmem:[#allocation5 + $0x10] sm:$0xff]  }
 0x14b   :  { %3987 = vmatprep.mubr.msk.bf16.mxu0 %vm4689_vm0, %v4688_v1  ;;  %4091 = vmatprep.subr.bf16.mxu1 %v4463_v31 }
 0x14c   :  { %4092 = vmatpush3.bf16.msra.mxu1 %v4463_v31  ;;  %v4476_v31 = vld [vmem:[#allocation5 + $0x78] sm:$0xff]  }
 0x152   :  { %3988 = vmatmul.mubr.bf16.gmra.mrb[20].mxu0 %v5017_v52  ;;  %v4464_v52 = vld [vmem:[#allocation5 + $0x18] sm:$0xff]  }
 0x153   :  { %3991 = vmatprep.mubr.msk.bf16.mxu0 %vm4689_vm0, %v4688_v1  ;;  %4093 = vmatprep.subr.bf16.mxu1 %v4464_v52 }
 0x154   :  { %4094 = vmatpush3.bf16.msra.mxu1 %v4464_v52 }
 0x15a   :  { %3992 = vmatmul.mubr.bf16.gmra.mrb[24].mxu0 %v5033_v18 }
 0x15b   :  { %3995 = vmatprep.mubr.msk.bf16.mxu0 %vm4689_vm0, %v4688_v1 }
 0x162   :  { %3996 = vmatmul.mubr.bf16.gmra.mrb[28].mxu0 %v5046_v40 }
 0x163   :  { %3999 = vmatprep.mubr.msk.bf16.mxu0 %vm4689_vm0, %v4688_v1 }
 0x16a   :  { %4000 = vmatmul.mubr.bf16.gmra.mrb[32].mxu0 %v5061_v6 }
 0x16b   :  { %4003 = vmatprep.mubr.msk.bf16.mxu0 %vm4689_vm0, %v4688_v1 }
 0x172   :  { %4004 = vmatmul.mubr.bf16.gmra.mrb[36].mxu0 %v5073_v30 }
 0x173   :  { %4007 = vmatprep.mubr.msk.bf16.mxu0 %vm4689_vm0, %v4688_v1 }
 0x17a   :  { %4008 = vmatmul.mubr.bf16.gmra.mrb[40].mxu0 %v5081_v41 }
 0x17b   :  { %4011 = vmatprep.mubr.msk.bf16.mxu0 %vm4689_vm0, %v4688_v1 }
 0x182   :  { %4012 = vmatmul.mubr.bf16.gmra.mrb[44].mxu0 %v5085_v43 }
 0x183   :  { %4015 = vmatprep.mubr.msk.bf16.mxu0 %vm4689_vm0, %v4688_v1 }
 0x18a   :  { %4016 = vmatmul.mubr.bf16.gmra.mrb[48].mxu0 %v5089_v49  ;;  %v4474_v49 = vld [vmem:[#allocation5 + $0x68] sm:$0xff]  }
 0x18b   :  { %4035 = vmatprep.mubr.msk.bf16.mxu0 %vm4689_vm0, %v4688_v1 }
 0x192   :  { %4036 = vmatmul.mubr.bf16.vlgmr.msra.gmra.mrb[0].mxu0 %v4923_v59  ;;  %v4465_v59 = vld [vmem:[#allocation5 + $0x20] sm:$0xff]  }
 0x193   :  { %4039 = vmatprep.mubr.msk.bf16.mxu0 %vm4689_vm0, %v4688_v1  ;;  %4095 = vmatprep.subr.bf16.mxu1 %v4465_v59 }
 0x194   :  { %4096 = vmatpush3.bf16.msra.mxu1 %v4465_v59 }
 0x19a   :  { %4040 = vmatmul.mubr.bf16.gmra.mrb[4].mxu0 %v4939_v16  ;;  %v4466_v16 = vld [vmem:[#allocation5 + $0x28] sm:$0xff]  }
 0x19b   :  { %4043 = vmatprep.mubr.msk.bf16.mxu0 %vm4689_vm0, %v4688_v1  ;;  %4097 = vmatprep.subr.bf16.mxu1 %v4466_v16 }
 0x19c   :  { %4098 = vmatpush3.bf16.msra.mxu1 %v4466_v16 }
 0x1a2   :  { %4044 = vmatmul.mubr.bf16.gmra.mrb[8].mxu0 %v4955_v35  ;;  %v4467_v35 = vld [vmem:[#allocation5 + $0x30] sm:$0xff]  }
 0x1a3   :  { %4047 = vmatprep.mubr.msk.bf16.mxu0 %vm4689_vm0, %v4688_v1  ;;  %4099 = vmatprep.subr.bf16.mxu1 %v4467_v35 }
 0x1a4   :  { %4100 = vmatpush3.bf16.msra.mxu1 %v4467_v35 }
 0x1aa   :  { %4048 = vmatmul.mubr.bf16.gmra.mrb[12].mxu0 %v4973_v55  ;;  %v4468_v55 = vld [vmem:[#allocation5 + $0x38] sm:$0xff]  }
 0x1ab   :  { %4051 = vmatprep.mubr.msk.bf16.mxu0 %vm4689_vm0, %v4688_v1  ;;  %4101 = vmatprep.subr.bf16.mxu1 %v4468_v55 }
 0x1ac   :  { %4102 = vmatpush3.bf16.msra.mxu1 %v4468_v55 }
 0x1b2   :  { %4052 = vmatmul.mubr.bf16.gmra.mrb[16].mxu0 %v4990_v17  ;;  %v4469_v17 = vld [vmem:[#allocation5 + $0x40] sm:$0xff]  }
 0x1b3   :  { %4055 = vmatprep.mubr.msk.bf16.mxu0 %vm4689_vm0, %v4688_v1  ;;  %4127 = vmatprep.subr.bf16.mxu1 %v4469_v17 }
 0x1ba   :  { %4056 = vmatmul.mubr.bf16.gmra.mrb[20].mxu0 %v5008_v38  ;;  %v5203_v38 = vld [vmem:[%s5412_s4] ss:$0 sm:$0xff] }
 0x1bb   :  { %4059 = vmatprep.mubr.msk.bf16.mxu0 %vm4689_vm0, %v4688_v1 }
 0x1c2   :  { %4060 = vmatmul.mubr.bf16.gmra.mrb[24].mxu0 %v5023_v2 }
 0x1c3   :  { %4063 = vmatprep.mubr.msk.bf16.mxu0 %vm4689_vm0, %v4688_v1 }
 0x1ca   :  { %4064 = vmatmul.mubr.bf16.gmra.mrb[28].mxu0 %v5038_v24 }
 0x1cb   :  { %4067 = vmatprep.mubr.msk.bf16.mxu0 %vm4689_vm0, %v4688_v1 }
 0x1d2   :  { %4068 = vmatmul.mubr.bf16.gmra.mrb[32].mxu0 %v5052_v46 }
 0x1d3   :  { %4071 = vmatprep.mubr.msk.bf16.mxu0 %vm4689_vm0, %v4688_v1 }
 0x1da   :  { %4072 = vmatmul.mubr.bf16.gmra.mrb[36].mxu0 %v5066_v12 }
 0x1db   :  { %4075 = vmatprep.mubr.msk.bf16.mxu0 %vm4689_vm0, %v4688_v1 }
 0x1e2   :  { %4076 = vmatmul.mubr.bf16.gmra.mrb[40].mxu0 %v5078_v34  ;;  %v4472_v34 = vld [vmem:[#allocation5 + $0x58] sm:$0xff]  }
 0x1e3   :  { %4079 = vmatprep.mubr.msk.bf16.mxu0 %vm4689_vm0, %v4688_v1 }
 0x1ea   :  { %4080 = vmatmul.mubr.bf16.gmra.mrb[44].mxu0 %v5087_v45 }
 0x1eb   :  { %4083 = vmatprep.mubr.msk.bf16.mxu0 %vm4689_vm0, %v4688_v1 }
 0x1f2   :  { %4084 = vmatmul.mubr.bf16.gmra.mrb[48].mxu0 %v5091_v50 }
 0x1f3   :  { %4223 = vmatprep.mubr.msk.bf16.mxu0 %vm4689_vm0, %v4688_v1 }
 0x265   :  { %v1210_v2 = vpop.f32.mrb[0].mxu0 }
 0x266   :  { %v4227_v18 = vadd.f32 %v5203_v38, %v1210_v2  ;;  %v4037_v24 = vpop.f32.mrb[1].mxu0 }
 0x267   :  { %v1213_v40 = vpop.f32.mrb[2].mxu0 }
 0x268   :  { %v4228_v46 = vadd.f32 %v5203_v38, %v1213_v40  ;;  %v4038_v0 = vpop.f32.mrb[3].mxu0  ;;  %v1339_v3 = vmax.f32 %v4227_v18, 0.0  ;;  %v5237_v18 = vld [vmem:[#allocation5 + $0x80] sm:$0xff]  }
 0x26a   :  { %v1340_v5 = vmax.f32 %v4228_v46, 0.0 }
 0x26c   :  { %v3594_v6 = vpack.c.bf16 %v1340_v5, %v1339_v3 }
 0x26d   :  { %v1218_v7 = vpop.f32.mrb[4].mxu0 }
 0x26e   :  { %v4229_v8 = vadd.f32 %v5203_v38, %v1218_v7  ;;  %v4041_v9 = vpop.f32.mrb[5].mxu0  ;;  %4103 = vmatprep.mubr.bf16.mxu1 %v3594_v6 }
 0x26f   :  { %v1221_v4 = vpop.f32.mrb[6].mxu0 }
 0x270   :  { %v1341_v11 = vmax.f32 %v4229_v8, 0.0  ;;  %v4230_v12 = vadd.f32 %v5203_v38, %v1221_v4  ;;  %v4042_v13 = vpop.f32.mrb[7].mxu0 }
 0x272   :  { %v5209_v15 = vpack.c.bf16 %v1341_v11, %v1340_v5  ;;  %v1342_v19 = vmax.f32 %v4230_v12, 0.0 }
 0x274   :  { %v5211_v20 = vpack.c.bf16 %v1342_v19, %v1341_v11 }
 0x275   :  { %v1226_v21 = vpop.f32.mrb[8].mxu0 }
 0x276   :  { %v4231_v22 = vadd.f32 %v5203_v38, %v1226_v21  ;;  %v4045_v23 = vpop.f32.mrb[9].mxu0  ;;  %4104 = vmatmul.mubr.bf16.vlgmr.msra.gmra.mrb[0].mxu1 %v5211_v20 }
 0x277   :  { %v1229_v25 = vpop.f32.mrb[10].mxu0  ;;  %4128 = vmatpush3.bf16.msra.mxu1 %v4469_v17 }
 0x278   :  { %v1343_v26 = vmax.f32 %v4231_v22, 0.0  ;;  %v4232_v27 = vadd.f32 %v5203_v38, %v1229_v25  ;;  %v4046_v30 = vpop.f32.mrb[11].mxu0  ;;  %4129 = vmatprep.subr.bf16.mxu1 %v4470_v14 }
 0x27a   :  { %v5216_v32 = vpack.c.bf16 %v1343_v26, %v1342_v19  ;;  %v1344_v54 = vmax.f32 %v4232_v27, 0.0 }
 0x27b   :  { %4130 = vmatpush3.bf16.msra.mxu1 %v4470_v14 }
 0x27c   :  { %v5218_v33 = vpack.c.bf16 %v1344_v54, %v1343_v26  ;;  %4131 = vmatprep.subr.bf16.mxu1 %v4471_v28 }
 0x27d   :  { %v1234_v36 = vpop.f32.mrb[12].mxu0 }
 0x27e   :  { %v4233_v39 = vadd.f32 %v5203_v38, %v1234_v36  ;;  %v4049_v41 = vpop.f32.mrb[13].mxu0  ;;  %4107 = vmatprep.mubr.bf16.mxu1 %v5218_v33 }
 0x27f   :  { %v1237_v58 = vpop.f32.mrb[14].mxu0  ;;  %4132 = vmatpush3.bf16.msra.mxu1 %v4471_v28 }
 0x280   :  { %v1345_v37 = vmax.f32 %v4233_v39, 0.0  ;;  %v4234_v42 = vadd.f32 %v5203_v38, %v1237_v58  ;;  %v4050_v43 = vpop.f32.mrb[15].mxu0  ;;  %4133 = vmatprep.subr.bf16.mxu1 %v4472_v34 }
 0x282   :  { %v5223_v44 = vpack.c.bf16 %v1345_v37, %v1344_v54  ;;  %v1346_v45 = vmax.f32 %v4234_v42, 0.0 }
 0x283   :  { %4134 = vmatpush3.bf16.msra.mxu1 %v4472_v34 }
 0x284   :  { %v5225_v47 = vpack.c.bf16 %v1346_v45, %v1345_v37  ;;  %4135 = vmatprep.subr.bf16.mxu1 %v4473_v57 }
 0x285   :  { %v1242_v50 = vpop.f32.mrb[16].mxu0 }
 0x286   :  { %v4235_v61 = vadd.f32 %v5203_v38, %v1242_v50  ;;  %v4053_v51 = vpop.f32.mrb[17].mxu0  ;;  %4108 = vmatmul.mubr.bf16.gmra.mrb[4].mxu1 %v5225_v47 }
 0x287   :  { %v1245_v53 = vpop.f32.mrb[18].mxu0  ;;  %4136 = vmatpush3.bf16.msra.mxu1 %v4473_v57 }
 0x288   :  { %v1347_v56 = vmax.f32 %v4235_v61, 0.0  ;;  %v4236_v60 = vadd.f32 %v5203_v38, %v1245_v53  ;;  %v4054_v62 = vpop.f32.mrb[19].mxu0  ;;  %4137 = vmatprep.subr.bf16.mxu1 %v4474_v49 }
 0x28a   :  { %v5230_v63 = vpack.c.bf16 %v1347_v56, %v1346_v45  ;;  %v1348_v48 = vmax.f32 %v4236_v60, 0.0 }
 0x28b   :  { %4138 = vmatpush3.bf16.msra.mxu1 %v4474_v49 }
 0x28c   :  { %v5232_v10 = vpack.c.bf16 %v1348_v48, %v1347_v56  ;;  %4139 = vmatprep.subr.bf16.mxu1 %v4475_v29 }
 0x28d   :  { %v1250_v52 = vpop.f32.mrb[20].mxu0 }
 0x28e   :  { %v4237_v59 = vadd.f32 %v5203_v38, %v1250_v52  ;;  %v4057_v16 = vpop.f32.mrb[21].mxu0  ;;  %4111 = vmatprep.mubr.bf16.mxu1 %v5232_v10 }
 0x28f   :  { %v1253_v35 = vpop.f32.mrb[22].mxu0  ;;  %4140 = vmatpush3.bf16.msra.mxu1 %v4475_v29 }
 0x290   :  { %v1349_v55 = vmax.f32 %v4237_v59, 0.0  ;;  %v4238_v17 = vadd.f32 %v5203_v38, %v1253_v35  ;;  %v4058_v2 = vpop.f32.mrb[23].mxu0  ;;  %4141 = vmatprep.subr.bf16.mxu1 %v4476_v31 }
 0x292   :  { %v5239_v24 = vpack.c.bf16 %v1349_v55, %v1348_v48  ;;  %v1350_v40 = vmax.f32 %v4238_v17, 0.0 }
 0x293   :  { %4142 = vmatpush3.bf16.msra.mxu1 %v4476_v31 }
 0x294   :  { %v5241_v46 = vpack.c.bf16 %v1350_v40, %v1349_v55  ;;  %4167 = vmatprep.subr.bf16.mxu1 %v5237_v18 }
 0x295   :  { %v1258_v0 = vpop.f32.mrb[24].mxu0 }
 0x296   :  { %v4239_v3 = vadd.f32 %v5203_v38, %v1258_v0  ;;  %v4061_v5 = vpop.f32.mrb[25].mxu0  ;;  %4112 = vmatmul.mubr.bf16.gmra.mrb[8].mxu1 %v5241_v46 }
 0x297   :  { %v1261_v6 = vpop.f32.mrb[26].mxu0 }
 0x298   :  { %v1351_v7 = vmax.f32 %v4239_v3, 0.0  ;;  %v4240_v8 = vadd.f32 %v5203_v38, %v1261_v6  ;;  %v4062_v9 = vpop.f32.mrb[27].mxu0 }
 0x29a   :  { %v5247_v4 = vpack.c.bf16 %v1351_v7, %v1350_v40  ;;  %v1352_v11 = vmax.f32 %v4240_v8, 0.0 }
 0x29c   :  { %v5249_v12 = vpack.c.bf16 %v1352_v11, %v1351_v7 }
 0x29d   :  { %v1266_v13 = vpop.f32.mrb[28].mxu0 }
 0x29e   :  { %v4241_v19 = vadd.f32 %v5203_v38, %v1266_v13  ;;  %v4065_v14 = vpop.f32.mrb[29].mxu0  ;;  %4115 = vmatprep.mubr.bf16.mxu1 %v5249_v12 }
 0x29f   :  { %v1269_v21 = vpop.f32.mrb[30].mxu0 }
 0x2a0   :  { %v1353_v22 = vmax.f32 %v4241_v19, 0.0  ;;  %v4242_v23 = vadd.f32 %v5203_v38, %v1269_v21  ;;  %v4066_v25 = vpop.f32.mrb[31].mxu0 }
 0x2a2   :  { %v5254_v26 = vpack.c.bf16 %v1353_v22, %v1352_v11  ;;  %v1354_v27 = vmax.f32 %v4242_v23, 0.0 }
 0x2a4   :  { %v5256_v30 = vpack.c.bf16 %v1354_v27, %v1353_v22 }
 0x2a5   :  { %v1274_v28 = vpop.f32.mrb[32].mxu0 }
 0x2a6   :  { %v4243_v54 = vadd.f32 %v5203_v38, %v1274_v28  ;;  %v4069_v34 = vpop.f32.mrb[33].mxu0  ;;  %4116 = vmatmul.mubr.bf16.gmra.mrb[12].mxu1 %v5256_v30 }
 0x2a7   :  { %v1277_v36 = vpop.f32.mrb[34].mxu0 }
 0x2a8   :  { %v1355_v39 = vmax.f32 %v4243_v54, 0.0  ;;  %v4244_v41 = vadd.f32 %v5203_v38, %v1277_v36  ;;  %v4070_v58 = vpop.f32.mrb[35].mxu0  ;;  %v4478_v36 = vld [vmem:[#allocation5 + $0x88] sm:$0xff]  }
 0x2a9   :  { %v4490_v58 = vld [vmem:[#allocation7 + $0x10] sm:$0xff]  }
 0x2aa   :  { %v5261_v37 = vpack.c.bf16 %v1355_v39, %v1354_v27  ;;  %v1356_v42 = vmax.f32 %v4244_v41, 0.0  ;;  %v4482_v41 = vld [vmem:[#allocation5 + $0xa8] sm:$0xff]  }
 0x2ac   :  { %v5263_v43 = vpack.c.bf16 %v1356_v42, %v1355_v39  ;;  %v4479_v39 = vld [vmem:[#allocation5 + $0x90] sm:$0xff]  }
 0x2ad   :  { %v1282_v57 = vpop.f32.mrb[36].mxu0 }
 0x2ae   :  { %v4245_v45 = vadd.f32 %v5203_v38, %v1282_v57  ;;  %v4073_v49 = vpop.f32.mrb[37].mxu0  ;;  %4119 = vmatprep.mubr.bf16.mxu1 %v5263_v43  ;;  %v4496_v57 = vld [vmem:[#allocation7 + $0x28] sm:$0xff]  }
 0x2af   :  { %v1285_v50 = vpop.f32.mrb[38].mxu0 }
 0x2b0   :  { %v1357_v61 = vmax.f32 %v4245_v45, 0.0  ;;  %v4246_v51 = vadd.f32 %v5203_v38, %v1285_v50  ;;  %v4074_v53 = vpop.f32.mrb[39].mxu0  ;;  %v4501_v45 = vld [vmem:[#allocation7 + $0xc0] sm:$0xff]  }
 0x2b2   :  { %v3614_v56 = vpack.c.bf16 %v1357_v61, %v1356_v42  ;;  %v1358_v60 = vmax.f32 %v4246_v51, 0.0  ;;  %v4493_v42 = vld [vmem:[#allocation7 + $0x60] sm:$0xff]  }
 0x2b4   :  { %v5268_v62 = vpack.c.bf16 %v1358_v60, %v1357_v61 }
 0x2b5   :  { %v1290_v29 = vpop.f32.mrb[40].mxu0 }
 0x2b6   :  { %v4247_v48 = vadd.f32 %v5203_v38, %v1290_v29  ;;  %v4077_v31 = vpop.f32.mrb[41].mxu0  ;;  %4120 = vmatmul.mubr.bf16.gmra.mrb[16].mxu1 %v5268_v62 }
 0x2b7   :  { %v1293_v52 = vpop.f32.mrb[42].mxu0 }
 0x2b8   :  { %v1359_v59 = vmax.f32 %v4247_v48, 0.0  ;;  %v4248_v16 = vadd.f32 %v5203_v38, %v1293_v52  ;;  %v4078_v35 = vpop.f32.mrb[43].mxu0 }
 0x2ba   :  { %v3615_v55 = vpack.c.bf16 %v1359_v59, %v1358_v60  ;;  %v1360_v17 = vmax.f32 %v4248_v16, 0.0 }
 0x2bc   :  { %v5273_v2 = vpack.c.bf16 %v1360_v17, %v1359_v59 }
 0x2bd   :  { %v1298_v40 = vpop.f32.mrb[44].mxu0 }
 0x2be   :  { %v4249_v0 = vadd.f32 %v5203_v38, %v1298_v40  ;;  %v4081_v3 = vpop.f32.mrb[45].mxu0  ;;  %4123 = vmatprep.mubr.bf16.mxu1 %v5273_v2 }
 0x2bf   :  { %v1301_v5 = vpop.f32.mrb[46].mxu0 }
 0x2c0   :  { %v1361_v6 = vmax.f32 %v4249_v0, 0.0  ;;  %v4250_v7 = vadd.f32 %v5203_v38, %v1301_v5  ;;  %v4082_v8 = vpop.f32.mrb[47].mxu0 }
 0x2c1   :  { %v4502_v8 = vld [vmem:[#allocation7 + $0x80] sm:$0xff]  }
 0x2c2   :  { %v3616_v9 = vpack.c.bf16 %v1361_v6, %v1360_v17  ;;  %v1362_v11 = vmax.f32 %v4250_v7, 0.0 }
 0x2c4   :  { %v5278_v13 = vpack.c.bf16 %v1362_v11, %v1361_v6 }
 0x2c5   :  { %v1306_v19 = vpop.f32.mrb[48].mxu0 }
 0x2c6   :  { %v4251_v14 = vadd.f32 %v5203_v38, %v1306_v19  ;;  %v4085_v21 = vpop.f32.mrb[49].mxu0  ;;  %4124 = vmatmul.mubr.bf16.gmra.mrb[20].mxu1 %v5278_v13 }
 0x2c7   :  { %v1309_v22 = vpop.f32.mrb[50].mxu0  ;;  %4143 = vmatprep.mubr.bf16.mxu1 %v5209_v15  ;;  %v4480_v15 = vld [vmem:[#allocation5 + $0x98] sm:$0xff]  }
 0x2c8   :  { %v1363_v23 = vmax.f32 %v4251_v14, 0.0  ;;  %v4252_v25 = vadd.f32 %v5203_v38, %v1309_v22  ;;  %v4086_v27 = vpop.f32.mrb[51].mxu0  ;;  %v4481_v38 = vld [vmem:[#allocation5 + $0xa0] sm:$0xff]  }
 0x2ca   :  { %v3617_v28 = vpack.c.bf16 %v1363_v23, %v1362_v11  ;;  %v1364_v54 = vmax.f32 %v4252_v25, 0.0  ;;  %v4504_v25 = vld [vmem:[#allocation7 + $0x88] sm:$0xff]  }
 0x2cc   :  { %v5284_v34 = vpack.c.bf16 %v1364_v54, %v1363_v23  ;;  %v4505_v54 = vld [vmem:[#allocation7 + $0xd0] sm:$0xff]  }
 0x2ce   :  { %4144 = vmatmul.mubr.bf16.vlgmr.msra.gmra.mrb[0].mxu1 %v5216_v32  ;;  %v4483_v32 = vld [vmem:[#allocation5 + $0xb0] sm:$0xff]  }
 0x2cf   :  { %4168 = vmatpush3.bf16.msra.mxu1 %v5237_v18  ;;  %4147 = vmatprep.mubr.bf16.mxu1 %v5223_v44  ;;  %v4484_v44 = vld [vmem:[#allocation5 + $0xb8] sm:$0xff]   ;;  %v4486_v18 = vld [vmem:[#allocation7] sm:$0xff]  }
 0x2d0   :  { %4169 = vmatprep.subr.bf16.mxu1 %v4478_v36 }
 0x2d3   :  { %4170 = vmatpush3.bf16.msra.mxu1 %v4478_v36 }
 0x2d4   :  { %4171 = vmatprep.subr.bf16.mxu1 %v4479_v39 }
 0x2d6   :  { %4148 = vmatmul.mubr.bf16.gmra.mrb[4].mxu1 %v5230_v63  ;;  %v4485_v63 = vld [vmem:[#allocation7 + $0x40] sm:$0xff]  }
 0x2d7   :  { %4151 = vmatprep.mubr.bf16.mxu1 %v5239_v24  ;;  %4172 = vmatpush3.bf16.msra.mxu1 %v4479_v39  ;;  %v4487_v24 = vld [vmem:[#allocation7 + $0x48] sm:$0xff]  }
 0x2d8   :  { %4173 = vmatprep.subr.bf16.mxu1 %v4480_v15 }
 0x2db   :  { %4174 = vmatpush3.bf16.msra.mxu1 %v4480_v15 }
 0x2dc   :  { %4175 = vmatprep.subr.bf16.mxu1 %v4481_v38 }
 0x2de   :  { %4152 = vmatmul.mubr.bf16.gmra.mrb[8].mxu1 %v5247_v4  ;;  %v4488_v4 = vld [vmem:[#allocation7 + $0x8] sm:$0xff]  }
 0x2df   :  { %4155 = vmatprep.mubr.bf16.mxu1 %v5254_v26  ;;  %4176 = vmatpush3.bf16.msra.mxu1 %v4481_v38  ;;  %v4489_v26 = vld [vmem:[#allocation7 + $0x50] sm:$0xff]  }
 0x2e0   :  { %4177 = vmatprep.subr.bf16.mxu1 %v4482_v41 }
 0x2e3   :  { %4178 = vmatpush3.bf16.msra.mxu1 %v4482_v41 }
 0x2e4   :  { %4179 = vmatprep.subr.bf16.mxu1 %v4483_v32 }
 0x2e6   :  { %4156 = vmatmul.mubr.bf16.gmra.mrb[12].mxu1 %v5261_v37  ;;  %v4491_v37 = vld [vmem:[#allocation7 + $0x58] sm:$0xff]  }
 0x2e7   :  { %4159 = vmatprep.mubr.bf16.mxu1 %v3614_v56  ;;  %4180 = vmatpush3.bf16.msra.mxu1 %v4483_v32 }
 0x2e8   :  { %4181 = vmatprep.subr.bf16.mxu1 %v4484_v44 }
 0x2eb   :  { %4182 = vmatpush3.bf16.msra.mxu1 %v4484_v44 }
 0x2ec   :  { %3742 = vmatprep.subr.bf16.mxu1 %v4485_v63  ;;  %v4506_v63 = vld [vmem:[#allocation7 + $0x90] sm:$0xff]  }
 0x2ee   :  { %4160 = vmatmul.mubr.bf16.gmra.mrb[16].mxu1 %v3615_v55 }
 0x2ef   :  { %4163 = vmatprep.mubr.bf16.mxu1 %v3616_v9 }
 0x2f6   :  { %4164 = vmatmul.mubr.bf16.gmra.mrb[20].mxu1 %v3617_v28 }
 0x2f7   :  { %4183 = vmatprep.mubr.bf16.mxu1 %v5211_v20  ;;  %v4492_v20 = vld [vmem:[#allocation7 + $0x18] sm:$0xff]  }
 0x2fe   :  { %4184 = vmatmul.mubr.bf16.vlgmr.msra.gmra.mrb[0].mxu1 %v5218_v33  ;;  %v4494_v33 = vld [vmem:[#allocation7 + $0x20] sm:$0xff]  }
 0x2ff   :  { %4187 = vmatprep.mubr.bf16.mxu1 %v5225_v47  ;;  %3743 = vmatpush3.bf16.msra.mxu1 %v4486_v18  ;;  %v4495_v47 = vld [vmem:[#allocation7 + $0x68] sm:$0xff]  }
 0x300   :  { %3744 = vmatprep.subr.bf16.mxu1 %v4487_v24  ;;  %v4507_v24 = vld [vmem:[#allocation7 + $0xd8] sm:$0xff]  }
 0x303   :  { %3745 = vmatpush3.bf16.msra.mxu1 %v4488_v4 }
 0x304   :  { %3746 = vmatprep.subr.bf16.mxu1 %v4489_v26 }
 0x306   :  { %4188 = vmatmul.mubr.bf16.gmra.mrb[4].mxu1 %v5232_v10  ;;  %v4497_v10 = vld [vmem:[#allocation7 + $0x70] sm:$0xff]  }
 0x307   :  { %4191 = vmatprep.mubr.bf16.mxu1 %v5241_v46  ;;  %3747 = vmatpush3.bf16.msra.mxu1 %v4490_v58  ;;  %v4498_v46 = vld [vmem:[#allocation7 + $0x30] sm:$0xff]  }
 0x308   :  { %3748 = vmatprep.subr.bf16.mxu1 %v4491_v37 }
 0x30b   :  { %3749 = vmatpush3.bf16.msra.mxu1 %v4492_v20 }
 0x30c   :  { %3750 = vmatprep.subr.bf16.mxu1 %v4493_v42  ;;  %v4508_v42 = vld [vmem:[#allocation7 + $0x98] sm:$0xff]  }
 0x30e   :  { %4192 = vmatmul.mubr.bf16.gmra.mrb[8].mxu1 %v5249_v12  ;;  %v4499_v12 = vld [vmem:[#allocation7 + $0x78] sm:$0xff]  }
 0x30f   :  { %4195 = vmatprep.mubr.bf16.mxu1 %v5256_v30  ;;  %3751 = vmatpush3.bf16.msra.mxu1 %v4494_v33  ;;  %v4500_v30 = vld [vmem:[#allocation7 + $0x38] sm:$0xff]  }
 0x310   :  { %3752 = vmatprep.subr.bf16.mxu1 %v4495_v47 }
 0x313   :  { %3753 = vmatpush3.bf16.msra.mxu1 %v4496_v57  ;;  %v4509_v57 = vld [vmem:[#allocation7 + $0xe0] sm:$0xff]  }
 0x314   :  { %3754 = vmatprep.subr.bf16.mxu1 %v4497_v10 }
 0x316   :  { %4196 = vmatmul.mubr.bf16.gmra.mrb[12].mxu1 %v5263_v43  ;;  %v5309_v43 = vld [vmem:[%s5414_s6] ss:$0 sm:$0xff] }
 0x317   :  { %4199 = vmatprep.mubr.bf16.mxu1 %v5268_v62  ;;  %3755 = vmatpush3.bf16.msra.mxu1 %v4498_v46 }
 0x318   :  { %3756 = vmatprep.subr.bf16.mxu1 %v4499_v12 }
 0x31b   :  { %3757 = vmatpush3.bf16.msra.mxu1 %v4500_v30 }
 0x31c   :  { %3764 = vmatprep.subr.bf16.mxu1 %v4501_v45 }
 0x31e   :  { %4200 = vmatmul.mubr.bf16.gmra.mrb[16].mxu1 %v5273_v2 }
 0x31f   :  { %4203 = vmatprep.mubr.bf16.mxu1 %v5278_v13  ;;  %v4503_v13 = vld [vmem:[#allocation7 + $0xc8] sm:$0xff]  }
 0x326   :  { %4204 = vmatmul.mubr.bf16.gmra.mrb[20].mxu1 %v5284_v34 }
 0x3d1   :  { %v4185_v49 = vpop.f32.mrb[0].mxu1 }
 0x3d2   :  { %v4253_v50 = vadd.f32 %v4185_v49, %v5309_v43  ;;  %v2034_v61 = vpop.f32.mrb[1].mxu1 }
 0x3d3   :  { %v4254_v51 = vadd.f32 %v5309_v43, %v2034_v61  ;;  %v4186_v53 = vpop.f32.mrb[2].mxu1 }
 0x3d4   :  { %v4255_v56 = vadd.f32 %v4186_v53, %v5309_v43  ;;  %v2037_v60 = vpop.f32.mrb[3].mxu1  ;;  %v2155_v29 = vmax.f32 %v4253_v50, 0.0  ;;  %v4510_v50 = vld [vmem:[#allocation7 + $0xa0] sm:$0xff]  }
 0x3d5   :  { %v4256_v62 = vadd.f32 %v5309_v43, %v2037_v60  ;;  %v2153_v31 = vmax.f32 %v4254_v51, 0.0  ;;  %v4511_v51 = vld [vmem:[#allocation7 + $0xe8] sm:$0xff]  }
 0x3d6   :  { %v2156_v48 = vmax.f32 %v4255_v56, 0.0 }
 0x3d7   :  { %v2154_v52 = vmax.f32 %v4256_v62, 0.0 }
 0x3d8   :  { %v2178_v59 = vadd.f32 %v2156_v48, %v2155_v29  ;;  %v4512_v48 = vld [vmem:[#allocation7 + $0xa8] sm:$0xff]  }
 0x3d9   :  { %v2177_v16 = vadd.f32 %v2154_v52, %v2153_v31  ;;  %v4189_v35 = vpop.f32.mrb[4].mxu1 }
 0x3da   :  { %v2190_v55 = vmul.f32 0.5, %v2178_v59  ;;  %v4257_v17 = vadd.f32 %v4189_v35, %v5309_v43  ;;  %v2050_v2 = vpop.f32.mrb[5].mxu1  ;;  %v4513_v59 = vld [vmem:[#allocation7 + $0xf0] sm:$0xff]  }
 0x3db   :  { %v2189_v40 = vmul.f32 0.5, %v2177_v16  ;;  %v4258_v0 = vadd.f32 %v5309_v43, %v2050_v2  ;;  %v4190_v3 = vpop.f32.mrb[6].mxu1 }
 0x3dc   :  { %v4259_v5 = vadd.f32 %v4190_v3, %v5309_v43  ;;  %v2053_v6 = vpop.f32.mrb[7].mxu1  ;;  %v2202_v7 = vpack.c.bf16 %v2190_v55, %v2190_v55  ;;  %v2159_v19 = vmax.f32 %v4257_v17, 0.0 }
 0x3dd   :  { %v2201_v9 = vpack.c.bf16 %v2189_v40, %v2189_v40  ;;  %v4260_v11 = vadd.f32 %v5309_v43, %v2053_v6  ;;  %v2157_v21 = vmax.f32 %v4258_v0, 0.0  ;;  %v4514_v0 = vld [vmem:[#allocation7 + $0xb0] sm:$0xff]  }
 0x3de   :  { %v2160_v14 = vmax.f32 %v4259_v5, 0.0  ;;  %3020 = vmatprep.mubr.bf16.mxu1 %v2202_v7  ;;  %v4515_v5 = vld [vmem:[#allocation7 + $0xf8] sm:$0xff]  }
 0x3df   :  { %v2158_v22 = vmax.f32 %v4260_v11, 0.0  ;;  %3021 = vmatmul.mubr.bf16.vlgmr.msra.gmra.mrb[24].mxu1 %v2201_v9 }
 0x3e0   :  { %v2180_v23 = vadd.f32 %v2160_v14, %v2159_v19  ;;  %3765 = vmatpush3.bf16.msra.mxu1 %v4502_v8 }
 0x3e1   :  { %v5319_v27 = vadd.f32 %v2158_v22, %v2157_v21  ;;  %v4193_v28 = vpop.f32.mrb[8].mxu1  ;;  %3766 = vmatprep.subr.bf16.mxu1 %v4503_v13  ;;  %v4516_v13 = vld [vmem:[#allocation7 + $0xb8] sm:$0xff]   ;;  %v4517_v22 = vld [vmem:[#allocation7 + $0x140] sm:$0xff]  }
 0x3e2   :  { %v2192_v34 = vmul.f32 0.5, %v2180_v23  ;;  %v4261_v36 = vadd.f32 %v4193_v28, %v5309_v43  ;;  %v2066_v39 = vpop.f32.mrb[9].mxu1 }
 0x3e3   :  { %v4262_v15 = vadd.f32 %v5309_v43, %v2066_v39  ;;  %v4194_v38 = vpop.f32.mrb[10].mxu1  ;;  %v2191_v19 = vmul.f32 0.5, %v5319_v27 }
 0x3e4   :  { %v4263_v41 = vadd.f32 %v4194_v38, %v5309_v43  ;;  %3767 = vmatpush3.bf16.msra.mxu1 %v4504_v25  ;;  %v2069_v32 = vpop.f32.mrb[11].mxu1  ;;  %v2204_v44 = vpack.c.bf16 %v2192_v34, %v2192_v34  ;;  %v2163_v4 = vmax.f32 %v4261_v36, 0.0 }
 0x3e5   :  { %v4264_v18 = vadd.f32 %v5309_v43, %v2069_v32  ;;  %3768 = vmatprep.subr.bf16.mxu1 %v4505_v54  ;;  %v2161_v58 = vmax.f32 %v4262_v15, 0.0  ;;  %v4518_v15 = vld [vmem:[#allocation7 + $0x100] sm:$0xff]   ;;  %v2203_v38 = vpack.c.bf16 %v2191_v19, %v2191_v19 }
 0x3e6   :  { %v2164_v26 = vmax.f32 %v4263_v41, 0.0  ;;  %3060 = vmatprep.mubr.bf16.mxu1 %v2204_v44  ;;  %v4519_v41 = vld [vmem:[#allocation7 + $0x148] sm:$0xff]  }
 0x3e7   :  { %v2162_v37 = vmax.f32 %v4264_v18, 0.0 }
 0x3e8   :  { %v2182_v20 = vadd.f32 %v2164_v26, %v2163_v4  ;;  %3769 = vmatpush3.bf16.msra.mxu1 %v4506_v63  ;;  %v4520_v26 = vld [vmem:[#allocation7 + $0x108] sm:$0xff]  }
 0x3e9   :  { %v5325_v33 = vadd.f32 %v2162_v37, %v2161_v58  ;;  %v4197_v47 = vpop.f32.mrb[12].mxu1  ;;  %3770 = vmatprep.subr.bf16.mxu1 %v4507_v24  ;;  %v4521_v37 = vld [vmem:[#allocation7 + $0x150] sm:$0xff]  }
 0x3ea   :  { %v4265_v10 = vadd.f32 %v4197_v47, %v5309_v43  ;;  %v2082_v46 = vpop.f32.mrb[13].mxu1  ;;  %v2194_v23 = vmul.f32 0.5, %v2182_v20  ;;  %v4522_v20 = vld [vmem:[#allocation7 + $0x110] sm:$0xff]   ;;  %v4525_v47 = vld [vmem:[#allocation7 + $0x160] sm:$0xff]  }
 0x3eb   :  { %v4266_v12 = vadd.f32 %v5309_v43, %v2082_v46  ;;  %v4198_v30 = vpop.f32.mrb[14].mxu1  ;;  %v4528_v46 = vld [vmem:[#allocation7 + $0x128] sm:$0xff]  }
 0x3ec   :  { %v4267_v45 = vadd.f32 %v4198_v30, %v5309_v43  ;;  %3771 = vmatpush3.bf16.msra.mxu1 %v4508_v42  ;;  %v2085_v49 = vpop.f32.mrb[15].mxu1  ;;  %v2167_v53 = vmax.f32 %v4265_v10, 0.0  ;;  %v2206_v63 = vpack.c.bf16 %v2194_v23, %v2194_v23  ;;  %v4524_v42 = vld [vmem:[#allocation7 + $0x118] sm:$0xff]   ;;  %v4527_v10 = vld [vmem:[#allocation7 + $0x168] sm:$0xff]   ;;  %v4530_v30 = vld [vmem:[#allocation7 + $0x130] sm:$0xff]  }
 0x3ed   :  { %v4268_v61 = vadd.f32 %v5309_v43, %v2085_v49  ;;  %3772 = vmatprep.subr.bf16.mxu1 %v4509_v57  ;;  %v2165_v60 = vmax.f32 %v4266_v12, 0.0  ;;  %v4526_v57 = vld [vmem:[#allocation7 + $0x120] sm:$0xff]   ;;  %v4529_v12 = vld [vmem:[#allocation7 + $0x170] sm:$0xff]   ;;  %v4532_v49 = vld [vmem:[#allocation7 + $0x138] sm:$0xff]  }
 0x3ee   :  { %v2168_v56 = vmax.f32 %v4267_v45, 0.0  ;;  %v4531_v45 = vld [vmem:[#allocation7 + $0x178] sm:$0xff]   ;;  %v4554_v23 = vld [vmem:[#allocation7 + $0x210] sm:$0xff]  }
 0x3ef   :  { %v2166_v62 = vmax.f32 %v4268_v61, 0.0  ;;  %v4533_v61 = vld [vmem:[#allocation7 + $0x1c0] sm:$0xff]  }
 0x3f0   :  { %v5331_v29 = vadd.f32 %v2168_v56, %v2167_v53  ;;  %3773 = vmatpush3.bf16.msra.mxu1 %v4510_v50  ;;  %v2193_v50 = vmul.f32 0.5, %v5325_v33  ;;  %v4534_v53 = vld [vmem:[#allocation7 + $0x180] sm:$0xff]   ;;  %v4539_v33 = vld [vmem:[#allocation7 + $0x1d8] sm:$0xff]  }
 0x3f1   :  { %v5333_v31 = vadd.f32 %v2166_v62, %v2165_v60  ;;  %v4201_v52 = vpop.f32.mrb[16].mxu1  ;;  %3774 = vmatprep.subr.bf16.mxu1 %v4511_v51  ;;  %v4535_v60 = vld [vmem:[#allocation7 + $0x1c8] sm:$0xff]  }
 0x3f2   :  { %v4269_v16 = vadd.f32 %v4201_v52, %v5309_v43  ;;  %v2098_v35 = vpop.f32.mrb[17].mxu1  ;;  %v2196_v51 = vmul.f32 0.5, %v5331_v29  ;;  %v2205_v56 = vpack.c.bf16 %v2193_v50, %v2193_v50  ;;  %v4537_v52 = vld [vmem:[#allocation7 + $0x1d0] sm:$0xff]   ;;  %v4541_v29 = vld [vmem:[#allocation7 + $0x1e0] sm:$0xff]  }
 0x3f3   :  { %v4270_v55 = vadd.f32 %v5309_v43, %v2098_v35  ;;  %v4202_v17 = vpop.f32.mrb[18].mxu1  ;;  %v4542_v35 = vld [vmem:[#allocation7 + $0x1a0] sm:$0xff]  }
 0x3f4   :  { %v4271_v2 = vadd.f32 %v4202_v17, %v5309_v43  ;;  %3775 = vmatpush3.bf16.msra.mxu1 %v4512_v48  ;;  %v2101_v40 = vpop.f32.mrb[19].mxu1  ;;  %v2171_v6 = vmax.f32 %v4269_v16, 0.0  ;;  %v2208_v62 = vpack.c.bf16 %v2196_v51, %v2196_v51  ;;  %v4536_v48 = vld [vmem:[#allocation7 + $0x188] sm:$0xff]   ;;  %v4540_v16 = vld [vmem:[#allocation7 + $0x198] sm:$0xff]  }
 0x3f5   :  { %v4272_v3 = vadd.f32 %v5309_v43, %v2101_v40  ;;  %3776 = vmatprep.subr.bf16.mxu1 %v4513_v59  ;;  %v2169_v8 = vmax.f32 %v4270_v55, 0.0  ;;  %v4538_v59 = vld [vmem:[#allocation7 + $0x190] sm:$0xff]   ;;  %v4543_v55 = vld [vmem:[#allocation7 + $0x1e8] sm:$0xff]  }
 0x3f6   :  { %v2172_v7 = vmax.f32 %v4271_v2, 0.0  ;;  %v4544_v17 = vld [vmem:[#allocation7 + $0x1a8] sm:$0xff]   ;;  %v4545_v2 = vld [vmem:[#allocation7 + $0x1f0] sm:$0xff]  }
 0x3f7   :  { %v2170_v9 = vmax.f32 %v4272_v3, 0.0  ;;  %v4546_v40 = vld [vmem:[#allocation7 + $0x1b0] sm:$0xff]   ;;  %v4548_v3 = vld [vmem:[#allocation7 + $0x1b8] sm:$0xff]  }
 0x3f8   :  { %v5339_v11 = vadd.f32 %v2172_v7, %v2171_v6  ;;  %3777 = vmatpush3.bf16.msra.mxu1 %v4514_v0  ;;  %v4547_v0 = vld [vmem:[#allocation7 + $0x1f8] sm:$0xff]   ;;  %v4549_v6 = vld [vmem:[#allocation7 + $0x240] sm:$0xff]  }
 0x3f9   :  { %v5342_v14 = vadd.f32 %v2170_v9, %v2169_v8  ;;  %v4205_v21 = vpop.f32.mrb[20].mxu1  ;;  %3778 = vmatprep.subr.bf16.mxu1 %v4515_v5  ;;  %v2195_v5 = vmul.f32 0.5, %v5333_v31  ;;  %v4550_v8 = vld [vmem:[#allocation7 + $0x200] sm:$0xff]   ;;  %v4555_v31 = vld [vmem:[#allocation7 + $0x258] sm:$0xff]  }
 0x3fa   :  { %v4273_v25 = vadd.f32 %v4205_v21, %v5309_v43  ;;  %v2114_v28 = vpop.f32.mrb[21].mxu1  ;;  %v2198_v7 = vmul.f32 0.5, %v5339_v11  ;;  %v4552_v21 = vld [vmem:[#allocation7 + $0x208] sm:$0xff]   ;;  %v4557_v11 = vld [vmem:[#allocation7 + $0x260] sm:$0xff]  }
 0x3fb   :  { %v4274_v54 = vadd.f32 %v5309_v43, %v2114_v28  ;;  %v4206_v34 = vpop.f32.mrb[22].mxu1  ;;  %v2207_v9 = vpack.c.bf16 %v2195_v5, %v2195_v5  ;;  %v4558_v28 = vld [vmem:[#allocation7 + $0x220] sm:$0xff]  }
 0x3fc   :  { %v4275_v36 = vadd.f32 %v4206_v34, %v5309_v43  ;;  %3779 = vmatpush3.bf16.msra.mxu1 %v4516_v13  ;;  %v2117_v39 = vpop.f32.mrb[23].mxu1  ;;  %v2175_v32 = vmax.f32 %v4273_v25, 0.0  ;;  %v4551_v13 = vld [vmem:[#allocation7 + $0x248] sm:$0xff]   ;;  %v2210_v19 = vpack.c.bf16 %v2198_v7, %v2198_v7  ;;  %v4556_v25 = vld [vmem:[#allocation7 + $0x218] sm:$0xff]  }
 0x3fd   :  { %v4276_v27 = vadd.f32 %v5309_v43, %v2117_v39  ;;  %3786 = vmatprep.subr.bf16.mxu1 %v4517_v22  ;;  %v2173_v18 = vmax.f32 %v4274_v54, 0.0  ;;  %v4523_v43 = vld [vmem:[#allocation7 + $0x158] sm:$0xff]   ;;  %v4553_v22 = vld [vmem:[#allocation7 + $0x250] sm:$0xff]   ;;  %v4559_v54 = vld [vmem:[#allocation7 + $0x268] sm:$0xff]  }
 0x3fe   :  { %v2176_v44 = vmax.f32 %v4275_v36, 0.0  ;;  %v4560_v34 = vld [vmem:[#allocation7 + $0x228] sm:$0xff]   ;;  %v4561_v36 = vld [vmem:[#allocation7 + $0x270] sm:$0xff]  }
 0x3ff   :  { %v2174_v24 = vmax.f32 %v4276_v27, 0.0  ;;  %3061 = vmatmul.mubr.bf16.vlgmr.msra.gmra.mrb[28].mxu1 %v2203_v38  ;;  %v4562_v39 = vld [vmem:[#allocation7 + $0x230] sm:$0xff]   ;;  %v4564_v38 = vld [vmem:[#allocation7 + $0x238] sm:$0xff]   ;;  %v2197_v27 = vmul.f32 0.5, %v5342_v14 }
 0x400   :  { %v5348_v4 = vadd.f32 %v2176_v44, %v2175_v32  ;;  %3787 = vmatpush3.bf16.msra.mxu1 %v4518_v15  ;;  %3100 = vmatprep.mubr.bf16.mxu1 %v2206_v63  ;;  %v4563_v15 = vld [vmem:[#allocation7 + $0x278] sm:$0xff]   ;;  %v4566_v44 = vld [vmem:[#allocation7 + $0x280] sm:$0xff]  }
 0x401   :  { %v5350_v58 = vadd.f32 %v2174_v24, %v2173_v18  ;;  %3788 = vmatprep.subr.bf16.mxu1 %v4519_v41  ;;  %v4565_v41 = vld [vmem:[#allocation7 + $0x2c0] sm:$0xff]   ;;  %v2209_v63 = vpack.c.bf16 %v2197_v27, %v2197_v27  ;;  %v4567_v18 = vld [vmem:[#allocation7 + $0x2c8] sm:$0xff]   ;;  %v4571_v14 = vld [vmem:[#allocation7 + $0x2d8] sm:$0xff]  }
 0x402   :  { %v2200_v32 = vmul.f32 0.5, %v5348_v4  ;;  %v4573_v4 = vld [vmem:[#allocation7 + $0x2e0] sm:$0xff]  }
 0x403   :  { %v2199_v50 = vmul.f32 0.5, %v5350_v58  ;;  %v4584_v58 = vld [vmem:[%s5417_s9 + $0x18] sm:$0xff]  }
 0x404   :  { %3789 = vmatpush3.bf16.msra.mxu1 %v4520_v26  ;;  %v2212_v24 = vpack.c.bf16 %v2200_v32, %v2200_v32  ;;  %v4568_v26 = vld [vmem:[#allocation7 + $0x288] sm:$0xff]  }
 0x405   :  { %3790 = vmatprep.subr.bf16.mxu1 %v4521_v37  ;;  %v4569_v37 = vld [vmem:[#allocation7 + $0x2d0] sm:$0xff]   ;;  %v2211_v51 = vpack.c.bf16 %v2199_v50, %v2199_v50 }
 0x408   :  { %3791 = vmatpush3.bf16.msra.mxu1 %v4522_v20  ;;  %v4570_v20 = vld [vmem:[#allocation7 + $0x290] sm:$0xff]  }
 0x409   :  { %3792 = vmatprep.subr.bf16.mxu1 %v4523_v43  ;;  %v4572_v43 = vld [vmem:[#allocation7 + $0x298] sm:$0xff]  }
 0x40c   :  { %3793 = vmatpush3.bf16.msra.mxu1 %v4524_v42  ;;  %v4574_v42 = vld [vmem:[#allocation7 + $0x2a0] sm:$0xff]  }
 0x40d   :  { %3794 = vmatprep.subr.bf16.mxu1 %v4525_v47  ;;  %v4575_v47 = vld [vmem:[#allocation7 + $0x2e8] sm:$0xff]  }
 0x410   :  { %3795 = vmatpush3.bf16.msra.mxu1 %v4526_v57  ;;  %v4576_v57 = vld [vmem:[#allocation7 + $0x2a8] sm:$0xff]  }
 0x411   :  { %3796 = vmatprep.subr.bf16.mxu1 %v4527_v10  ;;  %v4577_v10 = vld [vmem:[#allocation7 + $0x2f0] sm:$0xff]  }
 0x414   :  { %3797 = vmatpush3.bf16.msra.mxu1 %v4528_v46  ;;  %v4578_v46 = vld [vmem:[#allocation7 + $0x2b0] sm:$0xff]  }
 0x415   :  { %3798 = vmatprep.subr.bf16.mxu1 %v4529_v12  ;;  %v4579_v12 = vld [vmem:[#allocation7 + $0x2f8] sm:$0xff]  }
 0x418   :  { %3799 = vmatpush3.bf16.msra.mxu1 %v4530_v30  ;;  %v4581_v30 = vld [vmem:[%s5417_s9] sm:$0xff]  }
 0x419   :  { %3800 = vmatprep.subr.bf16.mxu1 %v4531_v45  ;;  %v4580_v45 = vld [vmem:[#allocation7 + $0x2b8] sm:$0xff]   ;;  %4208 = vmatpush3.bf16.msra.mxu0 %v4581_v30 }
 0x41a   :  { %4209 = vmatprep.subr.bf16.mxu0 %v4688_v1 }
 0x41c   :  { %3801 = vmatpush3.bf16.msra.mxu1 %v4532_v49  ;;  %v4582_v49 = vld [vmem:[%s5417_s9 + $0x8] sm:$0xff]  }
 0x41d   :  { %3808 = vmatprep.subr.bf16.mxu1 %v4533_v61  ;;  %4210 = vmatpush3.bf16.msra.mxu0 %v4582_v49  ;;  %v4583_v61 = vld [vmem:[%s5417_s9 + $0x10] sm:$0xff]  }
 0x41e   :  { %4211 = vmatprep.subr.bf16.mxu0 %v4688_v1 }
 0x41f   :  { %3101 = vmatmul.mubr.bf16.vlgmr.msra.gmra.mrb[32].mxu1 %v2205_v56 }
 0x420   :  { %3809 = vmatpush3.bf16.msra.mxu1 %v4534_v53  ;;  %3140 = vmatprep.mubr.bf16.mxu1 %v2208_v62  ;;  %v4585_v53 = vld [vmem:[%s5417_s9 + $0x20] sm:$0xff]  }
 0x421   :  { %3810 = vmatprep.subr.bf16.mxu1 %v4535_v60  ;;  %4212 = vmatpush3.bf16.msra.mxu0 %v4583_v61 }
 0x422   :  { %4213 = vmatprep.subr.bf16.mxu0 %v4688_v1 }
 0x424   :  { %3811 = vmatpush3.bf16.msra.mxu1 %v4536_v48 }
 0x425   :  { %3812 = vmatprep.subr.bf16.mxu1 %v4537_v52  ;;  %4214 = vmatpush3.bf16.msra.mxu0 %v4584_v58 }
 0x426   :  { %4215 = vmatprep.subr.bf16.mxu0 %v4688_v1 }
 0x428   :  { %3813 = vmatpush3.bf16.msra.mxu1 %v4538_v59  ;;  %v4586_v59 = vld [vmem:[%s5417_s9 + $0x28] sm:$0xff]  }
 0x429   :  { %3814 = vmatprep.subr.bf16.mxu1 %v4539_v33  ;;  %4216 = vmatpush3.bf16.msra.mxu0 %v4585_v53  ;;  %v4587_v33 = vld [vmem:[%s5417_s9 + $0x30] sm:$0xff]  }
 0x42a   :  { %4217 = vmatprep.subr.bf16.mxu0 %v4688_v1 }
 0x42c   :  { %3815 = vmatpush3.bf16.msra.mxu1 %v4540_v16  ;;  %v4588_v16 = vld [vmem:[%s5417_s9 + $0x38] sm:$0xff]  }
 0x42d   :  { %3816 = vmatprep.subr.bf16.mxu1 %v4541_v29  ;;  %4218 = vmatpush3.bf16.msra.mxu0 %v4586_v59  ;;  %v3461_v29 = vld [vmem:[%s5416_s8] ss:$0 sm:$0xff] }
 0x42e   :  { %4219 = vmatprep.subr.bf16.mxu0 %v4688_v1 }
 0x430   :  { %3817 = vmatpush3.bf16.msra.mxu1 %v4542_v35 }
 0x431   :  { %3818 = vmatprep.subr.bf16.mxu1 %v4543_v55  ;;  %4220 = vmatpush3.bf16.msra.mxu0 %v4587_v33 }
 0x432   :  { %4221 = vmatprep.subr.bf16.mxu0 %v4688_v1 }
 0x434   :  { %3819 = vmatpush3.bf16.msra.mxu1 %v4544_v17 }
 0x435   :  { %3820 = vmatprep.subr.bf16.mxu1 %v4545_v2  ;;  %4222 = vmatpush3.bf16.msra.mxu0 %v4588_v16 }
 0x438   :  { %3821 = vmatpush3.bf16.msra.mxu1 %v4546_v40 }
 0x439   :  { %3822 = vmatprep.subr.bf16.mxu1 %v4547_v0 }
 0x43c   :  { %3823 = vmatpush3.bf16.msra.mxu1 %v4548_v3 }
 0x43d   :  { %3830 = vmatprep.subr.bf16.mxu1 %v4549_v6 }
 0x43f   :  { %3141 = vmatmul.mubr.bf16.vlgmr.msra.gmra.mrb[36].mxu1 %v2207_v9 }
 0x440   :  { %3831 = vmatpush3.bf16.msra.mxu1 %v4550_v8  ;;  %3180 = vmatprep.mubr.bf16.mxu1 %v2210_v19 }
 0x441   :  { %3832 = vmatprep.subr.bf16.mxu1 %v4551_v13 }
 0x444   :  { %3833 = vmatpush3.bf16.msra.mxu1 %v4552_v21 }
 0x445   :  { %3834 = vmatprep.subr.bf16.mxu1 %v4553_v22 }
 0x448   :  { %3835 = vmatpush3.bf16.msra.mxu1 %v4554_v23 }
 0x449   :  { %3836 = vmatprep.subr.bf16.mxu1 %v4555_v31 }
 0x44c   :  { %3837 = vmatpush3.bf16.msra.mxu1 %v4556_v25 }
 0x44d   :  { %3838 = vmatprep.subr.bf16.mxu1 %v4557_v11 }
 0x450   :  { %3839 = vmatpush3.bf16.msra.mxu1 %v4558_v28 }
 0x451   :  { %3840 = vmatprep.subr.bf16.mxu1 %v4559_v54 }
 0x454   :  { %3841 = vmatpush3.bf16.msra.mxu1 %v4560_v34 }
 0x455   :  { %3842 = vmatprep.subr.bf16.mxu1 %v4561_v36 }
 0x458   :  { %3843 = vmatpush3.bf16.msra.mxu1 %v4562_v39 }
 0x459   :  { %3844 = vmatprep.subr.bf16.mxu1 %v4563_v15 }
 0x45c   :  { %3845 = vmatpush3.bf16.msra.mxu1 %v4564_v38 }
 0x45d   :  { %3852 = vmatprep.subr.bf16.mxu1 %v4565_v41 }
 0x45f   :  { %3181 = vmatmul.mubr.bf16.vlgmr.msra.gmra.mrb[40].mxu1 %v2209_v63 }
 0x460   :  { %3853 = vmatpush3.bf16.msra.mxu1 %v4566_v44  ;;  %3220 = vmatprep.mubr.bf16.mxu1 %v2212_v24 }
 0x461   :  { %3854 = vmatprep.subr.bf16.mxu1 %v4567_v18  ;;  %v3558_v18 = vld [vmem:[%s5418_s10] ss:$0 sm:$0xff] }
 0x464   :  { %3855 = vmatpush3.bf16.msra.mxu1 %v4568_v26 }
 0x465   :  { %3856 = vmatprep.subr.bf16.mxu1 %v4569_v37 }
 0x468   :  { %3857 = vmatpush3.bf16.msra.mxu1 %v4570_v20 }
 0x469   :  { %3858 = vmatprep.subr.bf16.mxu1 %v4571_v14 }
 0x46c   :  { %3859 = vmatpush3.bf16.msra.mxu1 %v4572_v43 }
 0x46d   :  { %3860 = vmatprep.subr.bf16.mxu1 %v4573_v4 }
 0x470   :  { %3861 = vmatpush3.bf16.msra.mxu1 %v4574_v42 }
 0x471   :  { %3862 = vmatprep.subr.bf16.mxu1 %v4575_v47 }
 0x474   :  { %3863 = vmatpush3.bf16.msra.mxu1 %v4576_v57 }
 0x475   :  { %3864 = vmatprep.subr.bf16.mxu1 %v4577_v10 }
 0x478   :  { %3865 = vmatpush3.bf16.msra.mxu1 %v4578_v46 }
 0x479   :  { %3866 = vmatprep.subr.bf16.mxu1 %v4579_v12 }
 0x47c   :  { %3867 = vmatpush3.bf16.msra.mxu1 %v4580_v45 }
 0x47f   :  { %3221 = vmatmul.mubr.bf16.vlgmr.msra.gmra.mrb[44].mxu1 %v2211_v51 }
 0x4b2   :  { %v3758_v56 = vpop.f32.mrb[24].mxu1 }
 0x4b3   :  { %v3759_v60 = vpop.f32.mrb[25].mxu1 }
 0x4b4   :  { %v3760_v62 = vadd.f32 %v3759_v60, %v3758_v56  ;;  %v3761_v48 = vpop.f32.mrb[26].mxu1 }
 0x4b5   :  { %v3762_v52 = vpop.f32.mrb[27].mxu1 }
 0x4b6   :  { %v3023_v17 = vadd.f32 %v3760_v62, %v3461_v29 }
 0x4d2   :  { %v3780_v35 = vpop.f32.mrb[28].mxu1 }
 0x4d3   :  { %v3781_v55 = vpop.f32.mrb[29].mxu1 }
 0x4d4   :  { %v3782_v2 = vadd.f32 %v3781_v55, %v3780_v35  ;;  %v3783_v40 = vpop.f32.mrb[30].mxu1 }
 0x4d5   :  { %v3784_v0 = vpop.f32.mrb[31].mxu1 }
 0x4d6   :  { %v3063_v3 = vadd.f32 %v3782_v2, %v3023_v17 }
 0x4f2   :  { %v3802_v5 = vpop.f32.mrb[32].mxu1 }
 0x4f3   :  { %v3803_v6 = vpop.f32.mrb[33].mxu1 }
 0x4f4   :  { %v3804_v7 = vadd.f32 %v3803_v6, %v3802_v5  ;;  %v3805_v8 = vpop.f32.mrb[34].mxu1 }
 0x4f5   :  { %v3806_v9 = vpop.f32.mrb[35].mxu1 }
 0x4f6   :  { %v3103_v13 = vadd.f32 %v3804_v7, %v3063_v3 }
 0x512   :  { %v3824_v19 = vpop.f32.mrb[36].mxu1 }
 0x513   :  { %v3825_v1 = vpop.f32.mrb[37].mxu1 }
 0x514   :  { %v3826_v21 = vadd.f32 %v3825_v1, %v3824_v19  ;;  %v3827_v22 = vpop.f32.mrb[38].mxu1 }
 0x515   :  { %v3828_v23 = vpop.f32.mrb[39].mxu1 }
 0x516   :  { %v3143_v31 = vadd.f32 %v3826_v21, %v3103_v13 }
 0x532   :  { %v3846_v25 = vpop.f32.mrb[40].mxu1 }
 0x533   :  { %v3847_v11 = vpop.f32.mrb[41].mxu1 }
 0x534   :  { %v3848_v28 = vadd.f32 %v3847_v11, %v3846_v25  ;;  %v3849_v54 = vpop.f32.mrb[42].mxu1 }
 0x535   :  { %v3850_v34 = vpop.f32.mrb[43].mxu1 }
 0x536   :  { %v3183_v36 = vadd.f32 %v3848_v28, %v3143_v31 }
 0x552   :  { %v3868_v39 = vpop.f32.mrb[44].mxu1 }
 0x553   :  { %v3869_v15 = vpop.f32.mrb[45].mxu1 }
 0x554   :  { %v3870_v38 = vadd.f32 %v3869_v15, %v3868_v39  ;;  %v3871_v27 = vpop.f32.mrb[46].mxu1 }
 0x555   :  { %v3872_v41 = vpop.f32.mrb[47].mxu1 }
 0x556   :  { %v3223_v32 = vadd.f32 %v3870_v38, %v3183_v36 }
 0x558   :  { %v3228_v44 = vmax.f32 %v3223_v32, 0.0 }
 0x55a   :  { %v3229_v63 = vpack.c.bf16 %v3228_v44, %v3228_v44 }
 0x55c   :  { %4224 = vmatmul.mubr.bf16.vlgmr.msra.gmra.mrb[52].mxu0 %v3229_v63 }
 0x62f   :  { %v3335_v24 = vpop.f32.mrb[52].mxu0 }
 0x630   :  { %v3336_v26 = vadd.f32 %v3558_v18, %v3335_v24  ;;  %v4225_v37 = vpop.f32.mrb[53].mxu0 }
 0x631   :  { %v3338_v20 = vpop.f32.mrb[54].mxu0 }
 0x632   :  { %3341 = vst [vmem:[#allocation8] sm:$0xff] %v3336_v26  ;;  %v4226_v14 = vpop.f32.mrb[55].mxu0 }
 0x633   :  { %4666 = shalt.err (!%p4663_p0)
}
 0x634   :  { %s4667_s10 = scalar_lea.hbm %s5419_s11, 128 }
 0x635   :  { %p4668_p1 = scmp.ne.s32.totalorder %s5419_s11, %s4667_s10  ;;  %p4671_p2 = scmp.lt.u32.totalorder %s4667_s10, %s5419_s11 }
 0x637   :  { %p4673_p3 = pnand %p4671_p2, %p4668_p1 }
 0x639   :  { %4676 = shalt.err (!%p4673_p3)
}
 0x63a   :  { %3351 = dma.vmem_to_hbm [thread:$0]  %s3349_s0, 128, %s5419_s11, [#allocation4]  }
 0x63b   :  { %4681 = dma.done.wait [#allocation4], 128  }
 0x63c   :  { %4682 = vsyncadd [#allocation4], 4294967168 }
 0x63d   :  { %3355 = vsyncpa [#allocation3], 1 }
 0x63e   :  { %3356 = vsyncpa [#allocation6], 1 }
 0x63f   :  { %3357 = vsyncpa [#allocation4], 1 }

</bundles_post_ra>
